<compile_context>
chip_gen: v7x
topology: tpu7x:2x2x1
jax: 0.10.0
libtpu: 0.0.40
codegen_flags: <defaults>
</compile_context>

<pallas_src>
import functools

import jax
import jax.numpy as jnp
from jax.experimental import pallas as pl
from jax.experimental.pallas import tpu as pltpu

_LN_EPS = 1e-5
_NEG_BIG = -1e30


def _round_up(x, m):
    return ((x + m - 1) // m) * m


def _pick_tile(total, target):
    """Largest multiple of 128 that divides `total` (itself a multiple of 128)
    and does not exceed max(target, 128)."""
    assert total % 128 == 0
    t = min(total, max(128, (target // 128) * 128))
    while total % t:
        t -= 128
    return t


def _default_vmem_limit():
    # Raise the scoped VMEM limit but stay below physical capacity (v7x: 64 MiB/TC).
    try:
        cap = int(pltpu.get_tpu_info().vmem_capacity_bytes)
    except Exception:
        cap = 128 * 1024 * 1024
    return int(min(100 * 1024 * 1024, cap * 9 // 10))


def _layer_norm_f32(v, w, b):
    mu = jnp.mean(v, axis=-1, keepdims=True)
    var = jnp.mean(jnp.square(v - mu), axis=-1, keepdims=True)
    return (v - mu) * jax.lax.rsqrt(var + _LN_EPS) * w + b


# ----------------------------------------------------------------------------
# Kernel 1: LayerNorm1 + QKV projection   (rows = flattened B*s_pad tokens)
# ----------------------------------------------------------------------------
def ln_qkv_kernel(x_ref, ln_w_ref, ln_b_ref, w_qkv_ref, b_qkv_ref, qkv_ref):
    x = x_ref[...].astype(jnp.float32)                       # (TM, D)  LN in fp32
    ln = _layer_norm_f32(x, ln_w_ref[...], ln_b_ref[...])
    qkv = jnp.dot(ln.astype(jnp.bfloat16), w_qkv_ref[...],   # bf16 x bf16 -> f32 acc
                  preferred_element_type=jnp.float32) + b_qkv_ref[...]
    qkv_ref[...] = qkv.astype(qkv_ref.dtype)


def ln_qkv(x, kp, tm, vmem_limit):
    n_rows, d = x.shape
    const = lambda i: (0, 0)
    return pl.pallas_call(
        ln_qkv_kernel,
        out_shape=jax.ShapeDtypeStruct((n_rows, 3 * d), jnp.bfloat16),
        grid=(n_rows // tm,),
        in_specs=[
            pl.BlockSpec((tm, d), lambda i: (i, 0)),          # x tile (pipelined)
            pl.BlockSpec((1, d), const),                      # ln1 weight (resident)
            pl.BlockSpec((1, d), const),                      # ln1 bias
            pl.BlockSpec((d, 3 * d), const),                  # in_proj_weight.T (Q pre-scaled)
            pl.BlockSpec((1, 3 * d), const),                  # in_proj_bias   (Q pre-scaled)
        ],
        out_specs=pl.BlockSpec((tm, 3 * d), lambda i: (i, 0)),
        compiler_params=pltpu.CompilerParams(
            dimension_semantics=("parallel",),
            vmem_limit_bytes=vmem_limit),
    )(x, kp['ln1_w'], kp['ln1_b'], kp['w_qkv'], kp['b_qkv'])


# ----------------------------------------------------------------------------
# Kernel 2: attention, reading Q/K/V straight from the flat qkv buffer
#           grid = (batch, query tiles); output is a lane-dense (tq, D) slab
# ----------------------------------------------------------------------------
def attention_kernel(*refs, n_head, seq_len, has_mask):
    if has_mask:
        q_ref, k_ref, v_ref, mask_ref, o_ref = refs
    else:
        q_ref, k_ref, v_ref, o_ref = refs
    s_pad, d = k_ref.shape
    tq = q_ref.shape[0]
    dh = d // n_head

    q = q_ref[...]                                            # (tq, D)   bf16, Q pre-scaled
    k = k_ref[...]                                            # (s_pad, D) bf16
    v = v_ref[...]                                            # (s_pad, D) bf16

    # Additive key bias: resident user mask rows + -inf on zero-padded keys.
    bias = None
    if has_mask:
        row0 = pl.multiple_of(pl.program_id(1) * tq, tq)
        bias = mask_ref[pl.ds(row0, tq), :]                   # (tq, s_pad) fp32
    if s_pad > seq_len:                                       # static Python condition
        kpad = jax.lax.broadcasted_iota(jnp.int32, (tq, s_pad), 1) >= seq_len
        kbias = jnp.where(kpad, jnp.float32(_NEG_BIG), jnp.float32(0.0))
        bias = kbias if bias is None else bias + kbias

    outs = []
    for h in range(n_head):                                   # unrolled over heads
        sl = slice(h * dh, (h + 1) * dh)
        scores = jax.lax.dot_general(                         # (tq, s_pad) fp32
            q[:, sl], k[:, sl], (((1,), (1,)), ((), ())),
            preferred_element_type=jnp.float32)
        if bias is not None:
            scores = scores + bias
        m = jnp.max(scores, axis=-1, keepdims=True)
        e = jnp.exp(scores - m)
        denom = jnp.sum(e, axis=-1, keepdims=True)
        p = (e * pl.reciprocal(denom, approx=True)).astype(v.dtype)
        outs.append(jnp.dot(p, v[:, sl], preferred_element_type=jnp.float32))
    # One lane-dense (tq, D) store instead of per-head (tq, dh) masked stores.
    o_ref[...] = jnp.concatenate(outs, axis=-1).astype(o_ref.dtype)


def attention(qkv3, mask, seq_len, tq, n_head, vmem_limit):
    b, s_pad, d3 = qkv3.shape
    d = d3 // 3
    in_specs = [
        pl.BlockSpec((None, tq, d), lambda bi, qi: (bi, qi, 0)),     # Q row tile  (cols 0:D)
        pl.BlockSpec((None, s_pad, d), lambda bi, qi: (bi, 0, 1)),   # full K      (cols D:2D)
        pl.BlockSpec((None, s_pad, d), lambda bi, qi: (bi, 0, 2)),   # full V      (cols 2D:3D)
    ]
    inputs = [qkv3, qkv3, qkv3]
    if mask is not None:
        # resident full (s_pad, s_pad) mask; rows sliced in-kernel (no per-batch refetch)
        in_specs.append(pl.BlockSpec((s_pad, s_pad), lambda bi, qi: (0, 0)))
        inputs.append(mask)
    kernel = functools.partial(attention_kernel, n_head=n_head, seq_len=seq_len,
                               has_mask=mask is not None)
    return pl.pallas_call(
        kernel,
        out_shape=jax.ShapeDtypeStruct((b, s_pad, d), jnp.bfloat16),
        grid=(b, s_pad // tq),
        in_specs=in_specs,
        out_specs=pl.BlockSpec((None, tq, d), lambda bi, qi: (bi, qi, 0)),
        compiler_params=pltpu.CompilerParams(
            dimension_semantics=("parallel", "parallel"),
            vmem_limit_bytes=vmem_limit),
    )(*inputs)


# ----------------------------------------------------------------------------
# Kernel 3: out-proj + residual + LayerNorm2 + MLP(QuickGELU) + residual
#           grid = (row tiles, MLP hidden chunks); fp32 accumulator in VMEM scratch
# ----------------------------------------------------------------------------
def out_proj_mlp_kernel(x_ref, a_ref, w_out_ref, b_out_ref, ln2_w_ref, ln2_b_ref,
                        w_fc_ref, b_fc_ref, w_proj_ref, b_proj_ref, o_ref,
                        x1_ref, ln2_ref, acc_ref):
    j = pl.program_id(1)

    @pl.when(j == 0)
    def _():
        x = x_ref[...].astype(jnp.float32)                    # residual stream, fp32
        attn = jnp.dot(a_ref[...], w_out_ref[...],
                       preferred_element_type=jnp.float32) + b_out_ref[...]
        x1 = x + attn
        x1_ref[...] = x1
        ln2_ref[...] = _layer_norm_f32(x1, ln2_w_ref[...],
                                       ln2_b_ref[...]).astype(ln2_ref.dtype)
        acc_ref[...] = jnp.zeros_like(acc_ref)

    h = jnp.dot(ln2_ref[...], w_fc_ref[...],
                preferred_element_type=jnp.float32) + b_fc_ref[...]
    h = h * jax.nn.sigmoid(1.702 * h)                         # QuickGELU (fp32)
    acc_ref[...] += jnp.dot(h.astype(jnp.bfloat16), w_proj_ref[...],
                            preferred_element_type=jnp.float32)

    @pl.when(j == pl.num_programs(1) - 1)
    def _():
        o_ref[...] = (x1_ref[...] + acc_ref[...] + b_proj_ref[...]).astype(o_ref.dtype)


def out_proj_mlp(x, a, kp, tm, fchunk, vmem_limit):
    n_rows, d = x.shape
    f = kp['w_fc'].shape[1]
    const = lambda i, j: (0, 0)
    return pl.pallas_call(
        out_proj_mlp_kernel,
        out_shape=jax.ShapeDtypeStruct((n_rows, d), x.dtype),
        grid=(n_rows // tm, f // fchunk),
        in_specs=[
            pl.BlockSpec((tm, d), lambda i, j: (i, 0)),       # residual x tile
            pl.BlockSpec((tm, d), lambda i, j: (i, 0)),       # attention output tile
            pl.BlockSpec((d, d), const),                      # out_proj.weight.T
            pl.BlockSpec((1, d), const),                      # out_proj.bias
            pl.BlockSpec((1, d), const),                      # ln2 weight
            pl.BlockSpec((1, d), const),                      # ln2 bias
            pl.BlockSpec((d, fchunk), lambda i, j: (0, j)),   # c_fc.weight.T  column chunk
            pl.BlockSpec((1, fchunk), lambda i, j: (0, j)),   # c_fc.bias      chunk
            pl.BlockSpec((fchunk, d), lambda i, j: (j, 0)),   # c_proj.weight.T row chunk
            pl.BlockSpec((1, d), const),                      # c_proj.bias
        ],
        out_specs=pl.BlockSpec((tm, d), lambda i, j: (i, 0)),
        scratch_shapes=[
            pltpu.VMEM((tm, d), jnp.float32),                 # x1  = x + attn
            pltpu.VMEM((tm, d), jnp.bfloat16),                # ln2(x1), bf16 MXU operand
            pltpu.VMEM((tm, d), jnp.float32),                 # fp32 MLP accumulator
        ],
        compiler_params=pltpu.CompilerParams(
            dimension_semantics=("parallel", "arbitrary"),
            vmem_limit_bytes=vmem_limit),
    )(x, a, kp['w_out'], kp['b_out'], kp['ln2_w'], kp['ln2_b'],
      kp['w_fc'], kp['b_fc'], kp['w_proj'], kp['b_proj'])


# ----------------------------------------------------------------------------
# Transformer: stack of `layers` ResidualAttentionBlocks
# ----------------------------------------------------------------------------
def init_block_params(key, width):
    d = width
    ks = jax.random.split(key, 6)
    s = 0.02

    def w(k, shape):  # matmul weights stored in bf16 (MXU operands / smaller residency)
        return (s * jax.random.normal(k, shape, jnp.float32)).astype(jnp.bfloat16)

    return {
        'ln1_w':  jnp.ones((1, d), jnp.float32),
        'ln1_b':  jnp.zeros((1, d), jnp.float32),
        'w_qkv':  w(ks[0], (d, 3 * d)),
        'b_qkv':  jnp.zeros((1, 3 * d), jnp.float32),
        'w_out':  w(ks[1], (d, d)),
        'b_out':  jnp.zeros((1, d), jnp.float32),
        'ln2_w':  jnp.ones((1, d), jnp.float32),
        'ln2_b':  jnp.zeros((1, d), jnp.float32),
        'w_fc':   w(ks[2], (d, 4 * d)),
        'b_fc':   0.01 * jax.random.normal(ks[3], (1, 4 * d), jnp.float32),
        'w_proj': w(ks[4], (4 * d, d)),
        'b_proj': 0.01 * jax.random.normal(ks[5], (1, d), jnp.float32),
    }


class TransformerPallas:
    """Equivalent of Transformer(width, layers, heads, attn_mask,
       design_details={'trainer': <anything but 'MaPLe'>}).

    Tuning knobs:
      row_tile : token-row tile for kernels 1/3 (v6e: raise toward 512; v7x: 128-256).
      q_tile   : query tile for the attention kernel.
      mlp_chunk: chunk size for the 4*D MLP hidden axis in kernel 3 (set e.g. 2048-2560
                 on v7x at D >= 1280 so resident weights fit 64 MiB VMEM; None = no
                 chunking, weights fully resident — best on v5e/v6e)."""

    def __init__(self, width, layers, heads, attn_mask=None, key=None,
                 row_tile=256, q_tile=256, mlp_chunk=None):
        assert width % heads == 0
        assert width % 128 == 0, \
            "width must be a multiple of 128 (lane-aligned Q/K/V column blocks)"
        self.width = width
        self.layers = layers
        self.heads = heads
        self.attn_mask = attn_mask           # additive (S, S) mask or None
        self.row_tile = row_tile
        self.q_tile = q_tile
        self.mlp_chunk = mlp_chunk
        self.scale = 1.0 / float(width // heads) ** 0.5
        key = jax.random.PRNGKey(0) if key is None else key
        keys = jax.random.split(key, layers)
        self.block_params = [init_block_params(k, width) for k in keys]

        # Fold the attention 1/sqrt(Dh) scale into the Q columns of the QKV projection
        # (zero runtime cost; removes a VPU pass over the fp32 score tensor per q-tile).
        qsc = jnp.ones((1, 3 * width), jnp.float32).at[:, :width].set(self.scale)
        self._kernel_params = []
        for p in self.block_params:
            kp = dict(p)
            kp['w_qkv'] = (p['w_qkv'].astype(jnp.float32) * qsc).astype(jnp.bfloat16)
            kp['b_qkv'] = p['b_qkv'] * qsc
            self._kernel_params.append(kp)

    def __call__(self, x_lnd):
        # x_lnd: (S, B, D), seq-first, as the PyTorch Transformer expects.
        S, B, D = x_lnd.shape
        H = self.heads
        vmem_limit = _default_vmem_limit()

        # One padded, lane-aligned layout for the whole layer stack (built once):
        # per-batch seq padded to a multiple of 128 so the key axis and all stores
        # are full-lane; layers chain via free reshapes only (no HBM round trips).
        s_pad = _round_up(S, 128)
        tq = _pick_tile(s_pad, self.q_tile)
        n_rows = B * s_pad
        tm = _pick_tile(n_rows, self.row_tile)
        f = 4 * D
        fchunk = f if self.mlp_chunk is None else _pick_tile(f, self.mlp_chunk)

        x = jnp.transpose(x_lnd, (1, 0, 2))                        # (B, S, D)
        x = jnp.pad(x, ((0, 0), (0, s_pad - S), (0, 0))).reshape(n_rows, D)

        mask = None
        if self.attn_mask is not None:
            mask = jnp.asarray(self.attn_mask, jnp.float32)
            mask = jnp.pad(mask, ((0, s_pad - S), (0, s_pad - S)))
            # zero-padded key columns get -inf from the in-kernel key-padding bias

        for kp in self._kernel_params:
            qkv = ln_qkv(x, kp, tm, vmem_limit)                    # (n_rows, 3D) bf16
            a = attention(qkv.reshape(B, s_pad, 3 * D),            # reads Q/K/V in place
                          mask, S, tq, H, vmem_limit)              # (B, s_pad, D) bf16
            x = out_proj_mlp(x, a.reshape(n_rows, D), kp, tm, fchunk, vmem_limit)

        x = x.reshape(B, s_pad, D)[:, :S]
        return jnp.transpose(x, (1, 0, 2))                         # back to (S, B, D)


# ----------------------------------------------------------------------------
# Pure-JAX reference with matching cast points (for numerical sanity check)
# ----------------------------------------------------------------------------
def reference_block(x_bsd, p, mask, n_head):
    B, S, D = x_bsd.shape
    Dh = D // n_head
    scale = 1.0 / float(Dh) ** 0.5
    x = x_bsd.astype(jnp.float32).reshape(B * S, D)

    ln1 = _layer_norm_f32(x, p['ln1_w'], p['ln1_b'])
    qkv = jnp.dot(ln1.astype(jnp.bfloat16), p['w_qkv'],
                  preferred_element_type=jnp.float32) + p['b_qkv']
    qkv = qkv.astype(jnp.bfloat16).reshape(B, S, 3, n_head, Dh)
    q = jnp.transpose(qkv[:, :, 0], (0, 2, 1, 3))
    k = jnp.transpose(qkv[:, :, 1], (0, 2, 1, 3))
    v = jnp.transpose(qkv[:, :, 2], (0, 2, 1, 3))
    s = jnp.einsum('bhqd,bhkd->bhqk', q, k,
                   preferred_element_type=jnp.float32) * scale
    if mask is not None:
        s = s + mask[None, None]
    m = jnp.max(s, axis=-1, keepdims=True)
    e = jnp.exp(s - m)
    pa = (e / jnp.sum(e, axis=-1, keepdims=True)).astype(jnp.bfloat16)
    o = jnp.einsum('bhqk,bhkd->bhqd', pa, v, preferred_element_type=jnp.float32)
    o = o.astype(jnp.bfloat16)
    o = jnp.transpose(o, (0, 2, 1, 3)).reshape(B * S, D)
    attn = jnp.dot(o, p['w_out'], preferred_element_type=jnp.float32) + p['b_out']
    x1 = x + attn

    ln2 = _layer_norm_f32(x1, p['ln2_w'], p['ln2_b'])
    h = jnp.dot(ln2.astype(jnp.bfloat16), p['w_fc'],
                preferred_element_type=jnp.float32) + p['b_fc']
    h = h * jax.nn.sigmoid(1.702 * h)
    mlp = jnp.dot(h.astype(jnp.bfloat16), p['w_proj'],
                  preferred_element_type=jnp.float32) + p['b_proj']
    return (x1 + mlp).reshape(B, S, D)


def reference_transformer(model, x_lnd):
    mask = None if model.attn_mask is None else jnp.asarray(model.attn_mask, jnp.float32)
    x = jnp.transpose(x_lnd, (1, 0, 2))
    for p in model.block_params:
        x = reference_block(x, p, mask, model.heads)
    return jnp.transpose(x, (1, 0, 2))


if __name__ == "__main__":
    width, layers, heads = 128, 2, 4
    seq, batch = 10, 2

    key = jax.random.PRNGKey(0)
    k_x, k_p, k_p2 = jax.random.split(key, 3)
    x = jax.random.normal(k_x, (seq, batch, width), jnp.float32)   # (S, B, D)

    # ---- no-mask (vision) path: exercises in-kernel key-padding bias (S=10 -> 128) ----
    model = TransformerPallas(width, layers, heads, attn_mask=None, key=k_p)
    out = jax.block_until_ready(model(x))
    assert out.shape == (seq, batch, width)
    ref = jax.block_until_ready(reference_transformer(model, x))
    err = float(jnp.max(jnp.abs(out - ref)))
    assert jnp.allclose(out, ref, rtol=2e-2, atol=2e-2), f"no-mask mismatch {err}"

    # ---- causal-mask (text) path: resident in-kernel-sliced mask ----
    causal = jnp.triu(jnp.full((seq, seq), float('-inf'), jnp.float32), k=1)
    model_m = TransformerPallas(width, layers, heads, attn_mask=causal, key=k_p2)
    out_m = jax.block_until_ready(model_m(x))
    ref_m = jax.block_until_ready(reference_transformer(model_m, x))
    err_m = float(jnp.max(jnp.abs(out_m - ref_m)))
    assert jnp.allclose(out_m, ref_m, rtol=2e-2, atol=2e-2), f"masked mismatch {err_m}"

    # ---- chunked-MLP path (v7x VMEM-constrained configuration), same params ----
    model_c = TransformerPallas(width, layers, heads, attn_mask=causal, key=k_p2,
                                mlp_chunk=128)
    out_c = jax.block_until_ready(model_c(x))
    err_c = float(jnp.max(jnp.abs(out_c - ref_m)))
    assert jnp.allclose(out_c, ref_m, rtol=2e-2, atol=2e-2), f"chunked mismatch {err_c}"

    print("KERNEL_OK")
</pallas_src>

<mosaic_0001>
module attributes {stable_mosaic.version = 11 : i64} {
  func.func @ln_qkv_kernel(%arg0: i32, %arg1: memref<256x128xf32, #tpu.memory_space<vmem>>, %arg2: memref<1x128xf32, #tpu.memory_space<vmem>>, %arg3: memref<1x128xf32, #tpu.memory_space<vmem>>, %arg4: memref<128x384xbf16, #tpu.memory_space<vmem>>, %arg5: memref<1x384xf32, #tpu.memory_space<vmem>>, %arg6: memref<256x384xbf16, #tpu.memory_space<vmem>>) attributes {dimension_semantics = [#tpu.dimension_semantics<parallel>], iteration_bounds = array<i64: 1>, scalar_prefetch = 0 : i64, scratch_operands = 0 : i64, tpu.core_type = #tpu.core_type<tc>, window_params = [{transform_indices = @transform_0, window_bounds = array<i64: 256, 128>}, {pipeline_mode = #tpu.pipeline_mode<synchronous>, transform_indices = @transform_1, window_bounds = array<i64: 1, 128>}, {pipeline_mode = #tpu.pipeline_mode<synchronous>, transform_indices = @transform_2, window_bounds = array<i64: 1, 128>}, {pipeline_mode = #tpu.pipeline_mode<synchronous>, transform_indices = @transform_3, window_bounds = array<i64: 128, 384>}, {pipeline_mode = #tpu.pipeline_mode<synchronous>, transform_indices = @transform_4, window_bounds = array<i64: 1, 384>}, {transform_indices = @transform_5, window_bounds = array<i64: 256, 384>}]} {
    %c0 = arith.constant 0 : index
    %c0_0 = arith.constant 0 : index
    %0 = vector.load %arg1[%c0, %c0_0] : memref<256x128xf32, #tpu.memory_space<vmem>>, vector<256x128xf32>
    %c0_1 = arith.constant 0 : index
    %c0_2 = arith.constant 0 : index
    %1 = vector.load %arg2[%c0_1, %c0_2] : memref<1x128xf32, #tpu.memory_space<vmem>>, vector<1x128xf32>
    %c0_3 = arith.constant 0 : index
    %c0_4 = arith.constant 0 : index
    %2 = vector.load %arg3[%c0_3, %c0_4] : memref<1x128xf32, #tpu.memory_space<vmem>>, vector<1x128xf32>
    %cst = arith.constant dense<0.000000e+00> : vector<256xf32>
    %3 = vector.multi_reduction <add>, %0, %cst [1] : vector<256x128xf32> to vector<256xf32>
    %4 = vector.shape_cast %3 : vector<256xf32> to vector<256x1xf32>
    %cst_5 = arith.constant 1.280000e+02 : f32
    %5 = vector.broadcast %cst_5 : f32 to vector<256x1xf32>
    %6 = arith.divf %4, %5 : vector<256x1xf32>
    %7 = vector.broadcast %6 : vector<256x1xf32> to vector<256x128xf32>
    %8 = arith.subf %0, %7 : vector<256x128xf32>
    %9 = arith.mulf %8, %8 : vector<256x128xf32>
    %cst_6 = arith.constant dense<0.000000e+00> : vector<256xf32>
    %10 = vector.multi_reduction <add>, %9, %cst_6 [1] : vector<256x128xf32> to vector<256xf32>
    %11 = vector.shape_cast %10 : vector<256xf32> to vector<256x1xf32>
    %cst_7 = arith.constant 1.280000e+02 : f32
    %12 = vector.broadcast %cst_7 : f32 to vector<256x1xf32>
    %13 = arith.divf %11, %12 : vector<256x1xf32>
    %14 = vector.broadcast %6 : vector<256x1xf32> to vector<256x128xf32>
    %15 = arith.subf %0, %14 : vector<256x128xf32>
    %cst_8 = arith.constant 9.99999974E-6 : f32
    %16 = vector.broadcast %cst_8 : f32 to vector<256x1xf32>
    %17 = arith.addf %13, %16 : vector<256x1xf32>
    %18 = math.rsqrt %17 : vector<256x1xf32>
    %19 = vector.broadcast %18 : vector<256x1xf32> to vector<256x128xf32>
    %20 = arith.mulf %15, %19 : vector<256x128xf32>
    %21 = vector.broadcast %1 : vector<1x128xf32> to vector<256x128xf32>
    %22 = arith.mulf %20, %21 : vector<256x128xf32>
    %23 = vector.broadcast %2 : vector<1x128xf32> to vector<256x128xf32>
    %24 = arith.addf %22, %23 : vector<256x128xf32>
    %25 = arith.truncf %24 : vector<256x128xf32> to vector<256x128xbf16>
    %c0_9 = arith.constant 0 : index
    %c0_10 = arith.constant 0 : index
    %26 = vector.load %arg4[%c0_9, %c0_10] : memref<128x384xbf16, #tpu.memory_space<vmem>>, vector<128x384xbf16>
    %cst_11 = arith.constant dense<0.000000e+00> : vector<256x384xf32>
    %27 = tpu.matmul %25, %26, %cst_11 {dimension_numbers = #tpu.dot_dimension_numbers<[1], [0], [0], [1], [0, 0, 1, 1], [], []>} : vector<256x128xbf16>, vector<128x384xbf16>, vector<256x384xf32> -> vector<256x384xf32>
    %c0_12 = arith.constant 0 : index
    %c0_13 = arith.constant 0 : index
    %28 = vector.load %arg5[%c0_12, %c0_13] : memref<1x384xf32, #tpu.memory_space<vmem>>, vector<1x384xf32>
    %29 = vector.broadcast %28 : vector<1x384xf32> to vector<256x384xf32>
    %30 = arith.addf %27, %29 : vector<256x384xf32>
    %31 = arith.truncf %30 : vector<256x384xf32> to vector<256x384xbf16>
    %c0_14 = arith.constant 0 : index
    %c0_15 = arith.constant 0 : index
    %32 = vector.load %arg6[%c0_14, %c0_15] : memref<256x384xbf16, #tpu.memory_space<vmem>>, vector<256x384xbf16>
    tpu.vector_store %arg6[%c0_14, %c0_15], %31 {strides = array<i32>} : memref<256x384xbf16, #tpu.memory_space<vmem>>, vector<256x384xbf16>,
    return
  }
  func.func @transform_0(%arg0: i32) -> (i32, i32) {
    %c0_i32 = arith.constant 0 : i32
    %c0_i32_0 = arith.constant 0 : i32
    return %arg0, %c0_i32 : i32, i32
  }
  func.func @transform_1(%arg0: i32) -> (i32, i32) {
    %c0_i32 = arith.constant 0 : i32
    %c0_i32_0 = arith.constant 0 : i32
    %c0_i32_1 = arith.constant 0 : i32
    return %c0_i32, %c0_i32_0 : i32, i32
  }
  func.func @transform_2(%arg0: i32) -> (i32, i32) {
    %c0_i32 = arith.constant 0 : i32
    %c0_i32_0 = arith.constant 0 : i32
    %c0_i32_1 = arith.constant 0 : i32
    return %c0_i32, %c0_i32_0 : i32, i32
  }
  func.func @transform_3(%arg0: i32) -> (i32, i32) {
    %c0_i32 = arith.constant 0 : i32
    %c0_i32_0 = arith.constant 0 : i32
    %c0_i32_1 = arith.constant 0 : i32
    return %c0_i32, %c0_i32_0 : i32, i32
  }
  func.func @transform_4(%arg0: i32) -> (i32, i32) {
    %c0_i32 = arith.constant 0 : i32
    %c0_i32_0 = arith.constant 0 : i32
    %c0_i32_1 = arith.constant 0 : i32
    return %c0_i32, %c0_i32_0 : i32, i32
  }
  func.func @transform_5(%arg0: i32) -> (i32, i32) {
    %c0_i32 = arith.constant 0 : i32
    %c0_i32_0 = arith.constant 0 : i32
    return %arg0, %c0_i32 : i32, i32
  }
}

</mosaic_0001>

<bundles_post_ra>
// kernel: tpu_custom_call.1
= control target key start
LH: loop header
LB: loop body
LE: loop exit
PB: predicated region body
PF: predicated region fallthrough
CT: control target
= control target key end

     0   :  { %10 = vsyncpa [#allocation3], 0  ;;  %s2632_s0 = inlined_call_operand.hbm [shape: f32[256,128], index: 0, kind: input, shape index: {}]   ;;  %s2633_s1 = inlined_call_operand.hbm [shape: f32[1,128], index: 1, kind: input, shape index: {}]   ;;  %s2634_s2 = inlined_call_operand.hbm [shape: f32[1,128], index: 2, kind: input, shape index: {}]   ;;  %s2635_s3 = inlined_call_operand.hbm [shape: bf16[128,384], index: 3, kind: input, shape index: {}]   ;;  %s2636_s4 = inlined_call_operand.hbm [shape: f32[1,384], index: 4, kind: input, shape index: {}]   ;;  %s2637_s5 = inlined_call_operand.hbm [shape: bf16[256,384], index: 5, kind: output, shape index: {}]  }
   0x1   :  { %11 = vsyncpa [#allocation6], 0 }
   0x2   :  { %12 = vsyncpa [#allocation9], 0 }
   0x3   :  { %13 = vsyncpa [#allocation4], 0  ;;  %s1986_s18 = smov [#allocation5]   ;;  %s1987_s20 = smov [#allocation8]  }
   0x4   :  { %s32_s19 = sshll.u32 %s1986_s18, 4  ;;  %s51_s21 = sshll.u32 %s1987_s20, 4  ;;  %s33_s19 = int_to_ptr.vmem [resolvable:$true] %s32_s19  ;;  %s2027_s21 = int_to_ptr.vmem [resolvable:$true] %s51_s21 }
   0x5   :  { %s1846_s24 = scalar_lea.hbm %s2633_s1, 16 }
   0x6   :  { %p1847_p0 = scmp.ne.s32.totalorder %s2633_s1, %s1846_s24  ;;  %p1850_p1 = scmp.lt.u32.totalorder %s1846_s24, %s2633_s1 }
   0x8   :  { %p1852_p2 = pnand %p1850_p1, %p1847_p0 }
   0xa   :  { %1855 = shalt.err (!%p1852_p2)
}
   0xb   :  { %s1856_s29 = scalar_lea.vmem %s33_s19, 16  ;;  %s1860_s30 = scalar_lea.vmem %s33_s19, 32 }
   0xc   :  { %p1857_p3 = scmp.ne.s32.totalorder %s33_s19, %s1856_s29  ;;  %p1861_p4 = scmp.lt.s32.totalorder %s33_s19, %s33_s19 }
   0xd   :  { %p1862_p5 = scmp.lt.s32.totalorder %s1860_s30, %s1856_s29 }
   0xf   :  { %p1863_p6 = por %p1862_p5, %p1861_p4 }
  0x11   :  { %p1864_p7 = pnand %p1863_p6, %p1857_p3 }
  0x13   :  { %1867 = shalt.err (!%p1864_p7)
}
  0x14   :  { %35 = dma.hbm_to_vmem [thread:$0]  %s2633_s1, 16, %s33_s19, [#allocation6]  }
  0x15   :  { %s1868_s10 = scalar_lea.hbm %s2635_s3, 3072 }
  0x16   :  { %p1869_p8 = scmp.ne.s32.totalorder %s2635_s3, %s1868_s10  ;;  %p1872_p9 = scmp.lt.u32.totalorder %s1868_s10, %s2635_s3 }
  0x18   :  { %p1874_p10 = pnand %p1872_p9, %p1869_p8 }
  0x1a   :  { %1877 = shalt.err (!%p1874_p10)
}
  0x1b   :  { %s1878_s15 = scalar_lea.vmem %s2027_s21, 3072  ;;  %p1883_p12 = scmp.lt.s32.totalorder %s2027_s21, %s2027_s21 }
  0x1c   :  { %p1879_p11 = scmp.ne.s32.totalorder %s2027_s21, %s1878_s15  ;;  %p1884_p13 = scmp.lt.s32.totalorder %s1878_s15, %s1878_s15 }
  0x1e   :  { %p1885_p0 = por %p1884_p13, %p1883_p12 }
  0x20   :  { %p1886_p1 = pnand %p1885_p0, %p1879_p11 }
  0x22   :  { %1889 = shalt.err (!%p1886_p1)
}
  0x23   :  { %s1988_s1 = smov 192   ;;  %s1989_s16 = smov 12  }
  0x24   :  { %57 = dma.hbm_to_vmem [thread:$0]  %s2635_s3, 3072, %s2027_s21, [#allocation9], %s1988_s1, %s1988_s1, %s1989_s16  }
  0x25   :  { %s1990_s19 = smov [#allocation2]   ;;  %s1890_s24 = scalar_lea.hbm %s2632_s0, 4096 }
  0x26   :  { %s19_s20 = sshll.u32 %s1990_s19, 4  ;;  %p1891_p2 = scmp.ne.s32.totalorder %s2632_s0, %s1890_s24  ;;  %s20_s20 = int_to_ptr.vmem [resolvable:$true] %s19_s20 }
  0x27   :  { %p1894_p3 = scmp.lt.u32.totalorder %s1890_s24, %s2632_s0 }
  0x29   :  { %p1896_p4 = pnand %p1894_p3, %p1891_p2 }
  0x2b   :  { %1899 = shalt.err (!%p1896_p4)
}
  0x2c   :  { %s1900_s29 = scalar_lea.vmem %s20_s20, 4096  ;;  %p1905_p6 = scmp.lt.s32.totalorder %s20_s20, %s20_s20 }
  0x2d   :  { %p1901_p5 = scmp.ne.s32.totalorder %s20_s20, %s1900_s29  ;;  %p1906_p7 = scmp.lt.s32.totalorder %s1900_s29, %s1900_s29 }
  0x2f   :  { %p1907_p8 = por %p1906_p7, %p1905_p6 }
  0x31   :  { %p1908_p9 = pnand %p1907_p8, %p1901_p5 }
  0x33   :  { %1911 = shalt.err (!%p1908_p9)
}
  0x34   :  { %s1991_s3 = smov 128   ;;  %s1992_s21 = smov 8  }
  0x35   :  { %25 = dma.hbm_to_vmem [thread:$0]  %s2632_s0, 4096, %s20_s20, [#allocation3], %s1991_s3, %s1991_s3, %s1992_s21  }
  0x36   :  { %s1993_s7 = smov [#allocation7]   ;;  %s1994_s9 = smov [#allocation10]  }
  0x37   :  { %s42_s8 = sshll.u32 %s1993_s7, 4  ;;  %s64_s10 = sshll.u32 %s1994_s9, 4  ;;  %s43_s8 = int_to_ptr.vmem [resolvable:$true] %s42_s8  ;;  %s65_s10 = int_to_ptr.vmem [resolvable:$true] %s64_s10 }
  0x38   :  { %s1912_s13 = scalar_lea.hbm %s2634_s2, 16 }
  0x39   :  { %p1913_p10 = scmp.ne.s32.totalorder %s2634_s2, %s1912_s13  ;;  %p1916_p11 = scmp.lt.u32.totalorder %s1912_s13, %s2634_s2 }
  0x3b   :  { %p1918_p12 = pnand %p1916_p11, %p1913_p10 }
  0x3d   :  { %1921 = shalt.err (!%p1918_p12)
}
  0x3e   :  { %s1922_s0 = scalar_lea.vmem %s43_s8, 16  ;;  %s1926_s19 = scalar_lea.vmem %s43_s8, 32 }
  0x3f   :  { %p1923_p13 = scmp.ne.s32.totalorder %s43_s8, %s1922_s0  ;;  %p1927_p0 = scmp.lt.s32.totalorder %s43_s8, %s43_s8 }
  0x40   :  { %p1928_p1 = scmp.lt.s32.totalorder %s1926_s19, %s1922_s0 }
  0x42   :  { %p1929_p2 = por %p1928_p1, %p1927_p0 }
  0x44   :  { %p1930_p3 = pnand %p1929_p2, %p1923_p13 }
  0x46   :  { %1933 = shalt.err (!%p1930_p3)
}
  0x47   :  { %45 = dma.hbm_to_vmem [thread:$0]  %s2634_s2, 16, %s43_s8, [#allocation6]  }
  0x48   :  { %s1934_s25 = scalar_lea.hbm %s2636_s4, 48 }
  0x49   :  { %p1935_p4 = scmp.ne.s32.totalorder %s2636_s4, %s1934_s25  ;;  %p1938_p5 = scmp.lt.u32.totalorder %s1934_s25, %s2636_s4 }
  0x4b   :  { %p1940_p6 = pnand %p1938_p5, %p1935_p4 }
  0x4d   :  { %1943 = shalt.err (!%p1940_p6)
}
  0x4e   :  { %s1944_s3 = scalar_lea.vmem %s65_s10, 48  ;;  %s1948_s21 = scalar_lea.vmem %s65_s10, 64 }
  0x4f   :  { %p1945_p7 = scmp.ne.s32.totalorder %s65_s10, %s1944_s3  ;;  %p1949_p8 = scmp.lt.s32.totalorder %s65_s10, %s65_s10 }
  0x50   :  { %p1950_p9 = scmp.lt.s32.totalorder %s1948_s21, %s1944_s3 }
  0x52   :  { %p1951_p10 = por %p1950_p9, %p1949_p8 }
  0x54   :  { %p1952_p11 = pnand %p1951_p10, %p1945_p7 }
  0x56   :  { %1955 = shalt.err (!%p1952_p11)
}
  0x57   :  { %67 = dma.hbm_to_vmem [thread:$0]  %s2636_s4, 48, %s65_s10, [#allocation9]  }
  0x58   :  { %1978 = dma.done.wait [#allocation3], 4096  }
  0x59   :  { %1979 = vsyncadd [#allocation3], 4294963200 }
  0x5a   :  { %1980 = dma.done.wait [#allocation6], 32  }
  0x5b   :  { %1981 = vsyncadd [#allocation6], 4294967264 }
  0x5c   :  { %1982 = dma.done.wait [#allocation9], 3120  }
  0x5d   :  { %1983 = vsyncadd [#allocation9], 4294964176  ;;  %v2097_v0 = vld [vmem:[#allocation2] sm:$0xff]  ;;  %v2103_v2 = vld [vmem:[#allocation2 + $0x8] sm:$0xff]  ;;  %s1996_s4 = smov [#allocation11]  }
  0x5e   :  { %v2099_v1 = vld [vmem:[#allocation2 + $0xc0] sm:$0xff]  ;;  %118 = vadd.xlane.f32.xlu0 %v2097_v0  ;;  %v2105_v3 = vld [vmem:[#allocation2 + $0xc8] sm:$0xff]  ;;  %v2109_v4 = vld [vmem:[#allocation2 + $0x10] sm:$0xff]  ;;  %s1483_s6 = sshll.u32 %s1996_s4, 4  ;;  %s1484_s6 = int_to_ptr.vmem [resolvable:$true] %s1483_s6 }
  0x5f   :  { %166 = vadd.xlane.f32.xlu1 %v2099_v1  ;;  %v2111_v5 = vld [vmem:[#allocation2 + $0x18] sm:$0xff]  ;;  %v2115_v6 = vld [vmem:[#allocation2 + $0xd0] sm:$0xff]  ;;  %v2119_v8 = vld [vmem:[#allocation2 + $0x20] sm:$0xff]  ;;  %s1956_s7 = scalar_lea.vmem %s1484_s6, 6144  ;;  %p1961_p13 = scmp.lt.s32.totalorder %s1484_s6, %s1484_s6 }
  0x60   :  { %v2117_v7 = vld [vmem:[#allocation2 + $0xd8] sm:$0xff]  ;;  %v2121_v9 = vld [vmem:[#allocation2 + $0x28] sm:$0xff]  ;;  %v2125_v10 = vld [vmem:[#allocation2 + $0xe0] sm:$0xff]  ;;  %p1957_p12 = scmp.ne.s32.totalorder %s1484_s6, %s1956_s7  ;;  %p1962_p0 = scmp.lt.s32.totalorder %s1956_s7, %s1956_s7 }
  0x61   :  { %v2127_v11 = vld [vmem:[#allocation2 + $0xe8] sm:$0xff]  ;;  %v2133_v12 = vld [vmem:[#allocation2 + $0x30] sm:$0xff]  ;;  %v2135_v13 = vld [vmem:[#allocation2 + $0x38] sm:$0xff] }
  0x62   :  { %120 = vadd.xlane.f32.xlu0 %v2103_v2  ;;  %v2139_v14 = vld [vmem:[#allocation2 + $0xf0] sm:$0xff]  ;;  %v2141_v15 = vld [vmem:[#allocation2 + $0xf8] sm:$0xff]  ;;  %v2145_v16 = vld [vmem:[#allocation2 + $0x40] sm:$0xff]  ;;  %p1963_p1 = por %p1962_p0, %p1961_p13 }
  0x63   :  { %168 = vadd.xlane.f32.xlu1 %v2105_v3  ;;  %v2147_v17 = vld [vmem:[#allocation2 + $0x48] sm:$0xff]  ;;  %v2151_v18 = vld [vmem:[#allocation2 + $0x50] sm:$0xff]  ;;  %v2153_v19 = vld [vmem:[#allocation2 + $0x58] sm:$0xff] }
  0x64   :  { %v2157_v20 = vld [vmem:[#allocation2 + $0x60] sm:$0xff]  ;;  %v2159_v21 = vld [vmem:[#allocation2 + $0x68] sm:$0xff]  ;;  %v2163_v22 = vld [vmem:[#allocation2 + $0x70] sm:$0xff]  ;;  %p1964_p2 = pnand %p1963_p1, %p1957_p12 }
  0x65   :  { %v2165_v23 = vld [vmem:[#allocation2 + $0x78] sm:$0xff]  ;;  %v2169_v24 = vld [vmem:[#allocation2 + $0x80] sm:$0xff]  ;;  %v2171_v25 = vld [vmem:[#allocation2 + $0x88] sm:$0xff] }
  0x66   :  { %122 = vadd.xlane.f32.xlu0 %v2109_v4  ;;  %v2175_v26 = vld [vmem:[#allocation2 + $0x90] sm:$0xff]  ;;  %v2177_v27 = vld [vmem:[#allocation2 + $0x98] sm:$0xff]  ;;  %v2181_v28 = vld [vmem:[#allocation2 + $0xa0] sm:$0xff] }
  0x67   :  { %124 = vadd.xlane.f32.xlu1 %v2111_v5  ;;  %v2183_v29 = vld [vmem:[#allocation2 + $0xa8] sm:$0xff]  ;;  %v2187_v30 = vld [vmem:[#allocation2 + $0xb0] sm:$0xff]  ;;  %v2189_v31 = vld [vmem:[#allocation2 + $0xb8] sm:$0xff] }
  0x68   :  { %v1750_v32 = vld [vmem:[#allocation8 + $0x4] ss:$12 sps:$4 sm:$0xff]   ;;  %v1752_v33 = vld [vmem:[#allocation8] ss:$12 sps:$4 sm:$0xff]   ;;  %v1753_v34 = vld [vmem:[#allocation8 + $0x1c] ss:$12 sps:$4 sm:$0xff]  }
  0x69   :  { %740 = vmatprep.subr.bf16.mxu0 %v1750_v32  ;;  %1723 = vmatprep.subr.bf16.mxu1 %v1750_v32 }
  0x6a   :  { %170 = vadd.xlane.f32.xlu0 %v2115_v6  ;;  %741 = vmatpush1.bf16.msra.mxu0 %v1752_v33 }
  0x6b   :  { %172 = vadd.xlane.f32.xlu1 %v2117_v7  ;;  %1731 = vmatpush1.bf16.msra.mxu1 %v1752_v33  ;;  %v1755_v33 = vld [vmem:[#allocation8 + $0x18] ss:$12 sps:$4 sm:$0xff]  }
  0x6c   :  { %742 = vmatprep.subr.bf16.mxu0 %v1753_v34  ;;  %1724 = vmatprep.subr.bf16.mxu1 %v1753_v34 }
  0x6e   :  { %126 = vadd.xlane.f32.xlu0 %v2119_v8  ;;  %743 = vmatpush1.bf16.msra.mxu0 %v1755_v33 }
  0x6f   :  { %128 = vadd.xlane.f32.xlu1 %v2121_v9  ;;  %1732 = vmatpush1.bf16.msra.mxu1 %v1755_v33 }
  0x72   :  { %174 = vadd.xlane.f32.xlu0 %v2125_v10 }
  0x73   :  { %176 = vadd.xlane.f32.xlu1 %v2127_v11 }
  0x76   :  { %130 = vadd.xlane.f32.xlu0 %v2133_v12 }
  0x77   :  { %132 = vadd.xlane.f32.xlu1 %v2135_v13 }
  0x7a   :  { %178 = vadd.xlane.f32.xlu0 %v2139_v14 }
  0x7b   :  { %180 = vadd.xlane.f32.xlu1 %v2141_v15 }
  0x7e   :  { %134 = vadd.xlane.f32.xlu0 %v2145_v16 }
  0x7f   :  { %136 = vadd.xlane.f32.xlu1 %v2147_v17 }
  0x82   :  { %138 = vadd.xlane.f32.xlu0 %v2151_v18 }
  0x83   :  { %140 = vadd.xlane.f32.xlu1 %v2153_v19 }
  0x86   :  { %142 = vadd.xlane.f32.xlu0 %v2157_v20 }
  0x87   :  { %144 = vadd.xlane.f32.xlu1 %v2159_v21 }
  0x8a   :  { %146 = vadd.xlane.f32.xlu0 %v2163_v22 }
  0x8b   :  { %148 = vadd.xlane.f32.xlu1 %v2165_v23 }
  0x8e   :  { %150 = vadd.xlane.f32.xlu0 %v2169_v24 }
  0x8f   :  { %152 = vadd.xlane.f32.xlu1 %v2171_v25 }
  0x92   :  { %154 = vadd.xlane.f32.xlu0 %v2175_v26 }
  0x93   :  { %156 = vadd.xlane.f32.xlu1 %v2177_v27 }
  0x96   :  { %158 = vadd.xlane.f32.xlu0 %v2181_v28 }
  0x97   :  { %160 = vadd.xlane.f32.xlu1 %v2183_v29 }
  0x9a   :  { %162 = vadd.xlane.f32.xlu0 %v2187_v30 }
  0x9b   :  { %164 = vadd.xlane.f32.xlu1 %v2189_v31 }
  0xeb   :  { %v119_v35 = vpop.xlane.xlu0 %118 }
  0xec   :  { %v167_v36 = vpop.xlane.xlu1 %166  ;;  %v183_v37 = vmul.f32 0.0078125, %v119_v35 }
  0xed   :  { %v207_v38 = vmul.f32 0.0078125, %v167_v36 }
  0xee   :  { %v2194_v39 = vsub.f32 %v2097_v0, %v183_v37 }
  0xef   :  { %v2197_v40 = vsub.f32 %v2099_v1, %v207_v38  ;;  %v121_v41 = vpop.xlane.xlu0 %120 }
  0xf0   :  { %v169_v42 = vpop.xlane.xlu1 %168  ;;  %v184_v43 = vmul.f32 0.0078125, %v121_v41  ;;  %v247_v44 = vmul.f32 %v2194_v39, %v2194_v39 }
  0xf1   :  { %v208_v45 = vmul.f32 0.0078125, %v169_v42  ;;  %v271_v48 = vmul.f32 %v2197_v40, %v2197_v40 }
  0xf2   :  { %v2202_v46 = vsub.f32 %v2103_v2, %v184_v43  ;;  %279 = vadd.xlane.f32.xlu0 %v247_v44 }
  0xf3   :  { %v2205_v47 = vsub.f32 %v2105_v3, %v208_v45  ;;  %v123_v49 = vpop.xlane.xlu0 %122  ;;  %v1758_v45 = vld [vmem:[#allocation8 + $0x30] ss:$12 sps:$4 sm:$0xff]  }
  0xf4   :  { %v125_v50 = vpop.xlane.xlu1 %124  ;;  %v185_v51 = vmul.f32 0.0078125, %v123_v49  ;;  %v248_v52 = vmul.f32 %v2202_v46, %v2202_v46 }
  0xf5   :  { %v186_v53 = vmul.f32 0.0078125, %v125_v50  ;;  %v272_v56 = vmul.f32 %v2205_v47, %v2205_v47 }
  0xf6   :  { %v2212_v54 = vsub.f32 %v2109_v4, %v185_v51  ;;  %327 = vadd.xlane.f32.xlu0 %v271_v48  ;;  %281 = vadd.xlane.f32.xlu1 %v248_v52  ;;  %v1759_v52 = vld [vmem:[#allocation8 + $0x4c] ss:$12 sps:$4 sm:$0xff]  }
  0xf7   :  { %v2215_v55 = vsub.f32 %v2111_v5, %v186_v53  ;;  %v171_v57 = vpop.xlane.xlu0 %170 }
  0xf8   :  { %v173_v58 = vpop.xlane.xlu1 %172  ;;  %v209_v59 = vmul.f32 0.0078125, %v171_v57  ;;  %v249_v60 = vmul.f32 %v2212_v54, %v2212_v54  ;;  %v1761_v57 = vld [vmem:[#allocation8 + $0x48] ss:$12 sps:$4 sm:$0xff]  }
  0xf9   :  { %v210_v61 = vmul.f32 0.0078125, %v173_v58  ;;  %v250_v0 = vmul.f32 %v2215_v55, %v2215_v55 }
  0xfa   :  { %v2222_v62 = vsub.f32 %v2115_v6, %v209_v59  ;;  %329 = vadd.xlane.f32.xlu1 %v272_v56  ;;  %283 = vadd.xlane.f32.xlu0 %v249_v60 }
  0xfb   :  { %v2225_v63 = vsub.f32 %v2117_v7, %v210_v61  ;;  %v127_v1 = vpop.xlane.xlu0 %126 }
  0xfc   :  { %v129_v2 = vpop.xlane.xlu1 %128  ;;  %v187_v3 = vmul.f32 0.0078125, %v127_v1  ;;  %v273_v4 = vmul.f32 %v2222_v62, %v2222_v62 }
  0xfd   :  { %v188_v5 = vmul.f32 0.0078125, %v129_v2  ;;  %v274_v7 = vmul.f32 %v2225_v63, %v2225_v63 }
  0xfe   :  { %v2232_v32 = vsub.f32 %v2119_v8, %v187_v3  ;;  %285 = vadd.xlane.f32.xlu1 %v250_v0  ;;  %331 = vadd.xlane.f32.xlu0 %v273_v4  ;;  %v1756_v8 = vld [vmem:[#allocation8 + $0x34] ss:$12 sps:$4 sm:$0xff]   ;;  %v1762_v0 = vld [vmem:[#allocation8 + $0x64] ss:$12 sps:$4 sm:$0xff]  }
  0xff   :  { %v2235_v6 = vsub.f32 %v2121_v9, %v188_v5  ;;  %v175_v34 = vpop.xlane.xlu0 %174  ;;  %744 = vmatprep.subr.bf16.mxu0 %v1756_v8  ;;  %1725 = vmatprep.subr.bf16.mxu1 %v1756_v8  ;;  %v1764_v3 = vld [vmem:[#allocation8 + $0x60] ss:$12 sps:$4 sm:$0xff]  }
 0x100   :  { %v177_v35 = vpop.xlane.xlu1 %176  ;;  %v211_v36 = vmul.f32 0.0078125, %v175_v34  ;;  %v251_v37 = vmul.f32 %v2232_v32, %v2232_v32  ;;  %745 = vmatpush1.bf16.msra.mxu0 %v1758_v45  ;;  %1733 = vmatpush1.bf16.msra.mxu1 %v1758_v45  ;;  %v1765_v34 = vld [vmem:[#allocation8 + $0x7c] ss:$12 sps:$4 sm:$0xff]  }
 0x101   :  { %v212_v38 = vmul.f32 0.0078125, %v177_v35  ;;  %v252_v42 = vmul.f32 %v2235_v6, %v2235_v6  ;;  %746 = vmatprep.subr.bf16.mxu0 %v1759_v52  ;;  %1726 = vmatprep.subr.bf16.mxu1 %v1759_v52 }
 0x102   :  { %v2242_v41 = vsub.f32 %v2125_v10, %v211_v36  ;;  %333 = vadd.xlane.f32.xlu1 %v274_v7  ;;  %287 = vadd.xlane.f32.xlu0 %v251_v37  ;;  %v1767_v37 = vld [vmem:[#allocation8 + $0x78] ss:$12 sps:$4 sm:$0xff]  }
 0x103   :  { %v2245_v9 = vsub.f32 %v2127_v11, %v212_v38  ;;  %v131_v43 = vpop.xlane.xlu0 %130 }
 0x104   :  { %v133_v44 = vpop.xlane.xlu1 %132  ;;  %v189_v48 = vmul.f32 0.0078125, %v131_v43  ;;  %v275_v49 = vmul.f32 %v2242_v41, %v2242_v41  ;;  %747 = vmatpush1.bf16.msra.mxu0 %v1761_v57  ;;  %1734 = vmatpush1.bf16.msra.mxu1 %v1761_v57 }
 0x105   :  { %v190_v50 = vmul.f32 0.0078125, %v133_v44  ;;  %v276_v51 = vmul.f32 %v2245_v9, %v2245_v9  ;;  %748 = vmatprep.subr.bf16.mxu0 %v1762_v0  ;;  %1727 = vmatprep.subr.bf16.mxu1 %v1762_v0  ;;  %v1768_v44 = vld [vmem:[#allocation8 + $0x94] ss:$12 sps:$4 sm:$0xff]  }
 0x106   :  { %v2252_v10 = vsub.f32 %v2133_v12, %v189_v48  ;;  %289 = vadd.xlane.f32.xlu1 %v252_v42  ;;  %335 = vadd.xlane.f32.xlu0 %v275_v49  ;;  %v1770_v49 = vld [vmem:[#allocation8 + $0x90] ss:$12 sps:$4 sm:$0xff]  }
 0x107   :  { %v2255_v11 = vsub.f32 %v2135_v13, %v190_v50  ;;  %v179_v53 = vpop.xlane.xlu0 %178 }
 0x108   :  { %v181_v56 = vpop.xlane.xlu1 %180  ;;  %v213_v58 = vmul.f32 0.0078125, %v179_v53  ;;  %v253_v59 = vmul.f32 %v2252_v10, %v2252_v10  ;;  %749 = vmatpush1.bf16.msra.mxu0 %v1764_v3  ;;  %1735 = vmatpush1.bf16.msra.mxu1 %v1764_v3 }
 0x109   :  { %v214_v60 = vmul.f32 0.0078125, %v181_v56  ;;  %v254_v61 = vmul.f32 %v2255_v11, %v2255_v11  ;;  %750 = vmatprep.subr.bf16.mxu0 %v1765_v34  ;;  %1728 = vmatprep.subr.bf16.mxu1 %v1765_v34  ;;  %v1771_v56 = vld [vmem:[#allocation8 + $0xac] ss:$12 sps:$4 sm:$0xff]  }
 0x10a   :  { %v2262_v12 = vsub.f32 %v2139_v14, %v213_v58  ;;  %337 = vadd.xlane.f32.xlu1 %v276_v51  ;;  %291 = vadd.xlane.f32.xlu0 %v253_v59  ;;  %v1773_v59 = vld [vmem:[#allocation8 + $0xa8] ss:$12 sps:$4 sm:$0xff]  }
 0x10b   :  { %v2265_v13 = vsub.f32 %v2141_v15, %v214_v60  ;;  %v135_v1 = vpop.xlane.xlu0 %134 }
 0x10c   :  { %v137_v2 = vpop.xlane.xlu1 %136  ;;  %v191_v4 = vmul.f32 0.0078125, %v135_v1  ;;  %v277_v5 = vmul.f32 %v2262_v12, %v2262_v12  ;;  %751 = vmatpush1.bf16.msra.mxu0 %v1767_v37  ;;  %1736 = vmatpush1.bf16.msra.mxu1 %v1767_v37 }
 0x10d   :  { %v192_v7 = vmul.f32 0.0078125, %v137_v2  ;;  %v278_v33 = vmul.f32 %v2265_v13, %v2265_v13  ;;  %752 = vmatprep.subr.bf16.mxu0 %v1768_v44  ;;  %1729 = vmatprep.subr.bf16.mxu1 %v1768_v44 }
 0x10e   :  { %v2272_v14 = vsub.f32 %v2145_v16, %v191_v4  ;;  %293 = vadd.xlane.f32.xlu1 %v254_v61  ;;  %339 = vadd.xlane.f32.xlu0 %v277_v5  ;;  %v1995_v4 = vmov 0  }
 0x10f   :  { %v2275_v15 = vsub.f32 %v2147_v17, %v192_v7  ;;  %v139_v35 = vpop.xlane.xlu0 %138  ;;  %772 = vmatprep.mubr.bf16.mxu0 %v1995_v4  ;;  %892 = vmatprep.mubr.bf16.mxu1 %v1995_v4 }
 0x110   :  { %v141_v36 = vpop.xlane.xlu1 %140  ;;  %v193_v38 = vmul.f32 0.0078125, %v139_v35  ;;  %v255_v8 = vmul.f32 %v2272_v14, %v2272_v14  ;;  %753 = vmatpush1.bf16.msra.mxu0 %v1770_v49  ;;  %1737 = vmatpush1.bf16.msra.mxu1 %v1770_v49  ;;  %v2321_v35 = vld [vmem:[#allocation8 + $0x8] ss:$12 sps:$4 sm:$0xff]  }
 0x111   :  { %v194_v42 = vmul.f32 0.0078125, %v141_v36  ;;  %v256_v43 = vmul.f32 %v2275_v15, %v2275_v15  ;;  %754 = vmatprep.subr.bf16.mxu0 %v1771_v56  ;;  %1730 = vmatprep.subr.bf16.mxu1 %v1771_v56 }
 0x112   :  { %v2282_v16 = vsub.f32 %v2151_v18, %v193_v38  ;;  %341 = vadd.xlane.f32.xlu1 %v278_v33  ;;  %295 = vadd.xlane.f32.xlu0 %v255_v8 }
 0x113   :  { %v2285_v17 = vsub.f32 %v2153_v19, %v194_v42  ;;  %v143_v45 = vpop.xlane.xlu0 %142 }
 0x114   :  { %v145_v48 = vpop.xlane.xlu1 %144  ;;  %v195_v50 = vmul.f32 0.0078125, %v143_v45  ;;  %v257_v51 = vmul.f32 %v2282_v16, %v2282_v16  ;;  %755 = vmatpush1.bf16.msra.mxu0 %v1773_v59  ;;  %1738 = vmatpush1.bf16.msra.mxu1 %v1773_v59 }
 0x115   :  { %v196_v52 = vmul.f32 0.0078125, %v145_v48  ;;  %v258_v53 = vmul.f32 %v2285_v17, %v2285_v17  ;;  %1675 = vmatprep.subr.bf16.mxu1 %v2321_v35 }
 0x116   :  { %v2292_v18 = vsub.f32 %v2157_v20, %v195_v50  ;;  %297 = vadd.xlane.f32.xlu1 %v256_v43  ;;  %299 = vadd.xlane.f32.xlu0 %v257_v51 }
 0x117   :  { %v2295_v19 = vsub.f32 %v2159_v21, %v196_v52  ;;  %v147_v57 = vpop.xlane.xlu0 %146 }
 0x118   :  { %v149_v58 = vpop.xlane.xlu1 %148  ;;  %v197_v60 = vmul.f32 0.0078125, %v147_v57  ;;  %v259_v61 = vmul.f32 %v2292_v18, %v2292_v18 }
 0x119   :  { %v198_v0 = vmul.f32 0.0078125, %v149_v58  ;;  %v260_v1 = vmul.f32 %v2295_v19, %v2295_v19 }
 0x11a   :  { %v2302_v20 = vsub.f32 %v2163_v22, %v197_v60  ;;  %301 = vadd.xlane.f32.xlu1 %v258_v53  ;;  %303 = vadd.xlane.f32.xlu0 %v259_v61 }
 0x11b   :  { %v2305_v21 = vsub.f32 %v2165_v23, %v198_v0  ;;  %v151_v2 = vpop.xlane.xlu0 %150 }
 0x11c   :  { %v153_v3 = vpop.xlane.xlu1 %152  ;;  %v199_v5 = vmul.f32 0.0078125, %v151_v2  ;;  %v261_v22 = vmul.f32 %v2302_v20, %v2302_v20 }
 0x11d   :  { %v200_v7 = vmul.f32 0.0078125, %v153_v3  ;;  %v262_v34 = vmul.f32 %v2305_v21, %v2305_v21 }
 0x11e   :  { %v2314_v33 = vsub.f32 %v2169_v24, %v199_v5  ;;  %305 = vadd.xlane.f32.xlu1 %v260_v1  ;;  %307 = vadd.xlane.f32.xlu0 %v261_v22 }
 0x11f   :  { %v2317_v23 = vsub.f32 %v2171_v25, %v200_v7  ;;  %v155_v36 = vpop.xlane.xlu0 %154 }
 0x120   :  { %v157_v37 = vpop.xlane.xlu1 %156  ;;  %v201_v38 = vmul.f32 0.0078125, %v155_v36  ;;  %v263_v8 = vmul.f32 %v2314_v33, %v2314_v33 }
 0x121   :  { %v202_v42 = vmul.f32 0.0078125, %v157_v37  ;;  %v264_v43 = vmul.f32 %v2317_v23, %v2317_v23 }
 0x122   :  { %v2327_v24 = vsub.f32 %v2175_v26, %v201_v38  ;;  %309 = vadd.xlane.f32.xlu1 %v262_v34  ;;  %311 = vadd.xlane.f32.xlu0 %v263_v8 }
 0x123   :  { %v2330_v25 = vsub.f32 %v2177_v27, %v202_v42  ;;  %v159_v44 = vpop.xlane.xlu0 %158 }
 0x124   :  { %v161_v45 = vpop.xlane.xlu1 %160  ;;  %v203_v48 = vmul.f32 0.0078125, %v159_v44  ;;  %v265_v49 = vmul.f32 %v2327_v24, %v2327_v24 }
 0x125   :  { %v204_v50 = vmul.f32 0.0078125, %v161_v45  ;;  %v266_v27 = vmul.f32 %v2330_v25, %v2330_v25 }
 0x126   :  { %v2337_v51 = vsub.f32 %v2181_v28, %v203_v48  ;;  %313 = vadd.xlane.f32.xlu1 %v264_v43  ;;  %315 = vadd.xlane.f32.xlu0 %v265_v49 }
 0x127   :  { %v2340_v26 = vsub.f32 %v2183_v29, %v204_v50  ;;  %v163_v52 = vpop.xlane.xlu0 %162 }
 0x128   :  { %v165_v53 = vpop.xlane.xlu1 %164  ;;  %v205_v56 = vmul.f32 0.0078125, %v163_v52  ;;  %v267_v57 = vmul.f32 %v2337_v51, %v2337_v51 }
 0x129   :  { %v206_v58 = vmul.f32 0.0078125, %v165_v53  ;;  %v268_v29 = vmul.f32 %v2340_v26, %v2340_v26 }
 0x12a   :  { %v2347_v59 = vsub.f32 %v2187_v30, %v205_v56  ;;  %317 = vadd.xlane.f32.xlu1 %v266_v27  ;;  %319 = vadd.xlane.f32.xlu0 %v267_v57 }
 0x12b   :  { %v2350_v28 = vsub.f32 %v2189_v31, %v206_v58 }
 0x12c   :  { %v269_v60 = vmul.f32 %v2347_v59, %v2347_v59 }
 0x12d   :  { %v270_v61 = vmul.f32 %v2350_v28, %v2350_v28 }
 0x12e   :  { %321 = vadd.xlane.f32.xlu1 %v268_v29  ;;  %323 = vadd.xlane.f32.xlu0 %v269_v60  ;;  %v2359_v29 = vld [vmem:[#allocation5] ss:$0 sm:$0xff] }
 0x132   :  { %325 = vadd.xlane.f32.xlu1 %v270_v61 }
 0x17f   :  { %v280_v0 = vpop.xlane.xlu0 %279 }
 0x180   :  { %v343_v30 = vmul.f32 0.0078125, %v280_v0 }
 0x182   :  { %v375_v1 = vadd.f32 1e-05, %v343_v30 }
 0x183   :  { %v282_v2 = vpop.xlane.xlu1 %281  ;;  %v328_v3 = vpop.xlane.xlu0 %327 }
 0x184   :  { %1782 = vrsqrt.f32 %v375_v1  ;;  %v344_v31 = vmul.f32 0.0078125, %v282_v2  ;;  %v367_v5 = vmul.f32 0.0078125, %v328_v3 }
 0x186   :  { %v376_v22 = vadd.f32 1e-05, %v344_v31  ;;  %v399_v7 = vadd.f32 1e-05, %v367_v5 }
 0x187   :  { %v330_v34 = vpop.xlane.xlu1 %329  ;;  %v284_v36 = vpop.xlane.xlu0 %283 }
 0x188   :  { %1784 = vrsqrt.f32 %v376_v22  ;;  %v368_v37 = vmul.f32 0.0078125, %v330_v34  ;;  %v345_v38 = vmul.f32 0.0078125, %v284_v36 }
 0x189   :  { %1786 = vrsqrt.f32 %v399_v7 }
 0x18a   :  { %v400_v8 = vadd.f32 1e-05, %v368_v37  ;;  %v377_v42 = vadd.f32 1e-05, %v345_v38 }
 0x18b   :  { %v286_v43 = vpop.xlane.xlu1 %285  ;;  %v332_v44 = vpop.xlane.xlu0 %331 }
 0x18c   :  { %1788 = vrsqrt.f32 %v400_v8  ;;  %v346_v45 = vmul.f32 0.0078125, %v286_v43  ;;  %v369_v48 = vmul.f32 0.0078125, %v332_v44 }
 0x18d   :  { %1790 = vrsqrt.f32 %v377_v42 }
 0x18e   :  { %v1783_v49 = vpop.eup %1782  ;;  %v378_v50 = vadd.f32 1e-05, %v346_v45  ;;  %v401_v27 = vadd.f32 1e-05, %v369_v48 }
 0x18f   :  { %v334_v52 = vpop.xlane.xlu1 %333  ;;  %v288_v53 = vpop.xlane.xlu0 %287  ;;  %v439_v56 = vmul.f32 %v1783_v49, %v2194_v39  ;;  %v2363_v39 = vld [vmem:[#allocation7] ss:$0 sm:$0xff] }
 0x190   :  { %1792 = vrsqrt.f32 %v378_v50  ;;  %v370_v57 = vmul.f32 0.0078125, %v334_v52  ;;  %v347_v58 = vmul.f32 0.0078125, %v288_v53 }
 0x191   :  { %1794 = vrsqrt.f32 %v401_v27  ;;  %v477_v31 = vmul.f32 %v2359_v29, %v439_v56 }
 0x192   :  { %v1785_v60 = vpop.eup %1784  ;;  %v402_v61 = vadd.f32 1e-05, %v370_v57  ;;  %v379_v0 = vadd.f32 1e-05, %v347_v58 }
 0x193   :  { %v1787_v30 = vpop.eup %1786  ;;  %v290_v1 = vpop.xlane.xlu1 %289  ;;  %v440_v3 = vmul.f32 %v1785_v60, %v2202_v46  ;;  %v515_v46 = vadd.f32 %v2363_v39, %v477_v31 }
 0x194   :  { %v336_v2 = vpop.xlane.xlu0 %335  ;;  %1796 = vrsqrt.f32 %v402_v61  ;;  %v348_v5 = vmul.f32 0.0078125, %v290_v1  ;;  %v463_v7 = vmul.f32 %v1787_v30, %v2197_v40 }
 0x195   :  { %v371_v22 = vmul.f32 0.0078125, %v336_v2  ;;  %1798 = vrsqrt.f32 %v379_v0  ;;  %v478_v34 = vmul.f32 %v2359_v29, %v440_v3 }
 0x196   :  { %v1789_v36 = vpop.eup %1788  ;;  %v380_v37 = vadd.f32 1e-05, %v348_v5  ;;  %v501_v48 = vmul.f32 %v2359_v29, %v463_v7  ;;  %v1775_v5 = vld [vmem:[#allocation8 + $0x20] ss:$12 sps:$4 sm:$0xff]  }
 0x197   :  { %v403_v38 = vadd.f32 1e-05, %v371_v22  ;;  %v1791_v8 = vpop.eup %1790  ;;  %v338_v42 = vpop.xlane.xlu1 %337  ;;  %v516_v44 = vadd.f32 %v2363_v39, %v478_v34  ;;  %v464_v45 = vmul.f32 %v1789_v36, %v2205_v47 }
 0x198   :  { %v292_v43 = vpop.xlane.xlu0 %291  ;;  %1800 = vrsqrt.f32 %v380_v37  ;;  %v372_v49 = vmul.f32 0.0078125, %v338_v42  ;;  %v441_v52 = vmul.f32 %v1791_v8, %v2212_v54  ;;  %v539_v61 = vadd.f32 %v2363_v39, %v501_v48  ;;  %v1776_v48 = vld [vmem:[#allocation8 + $0x38] ss:$12 sps:$4 sm:$0xff]  }
 0x199   :  { %v349_v40 = vmul.f32 0.0078125, %v292_v43  ;;  %1802 = vrsqrt.f32 %v403_v38  ;;  %v2371_v50 = vpack.c.bf16 %v516_v44, %v515_v46  ;;  %v502_v27 = vmul.f32 %v2359_v29, %v464_v45 }
 0x19a   :  { %v1793_v53 = vpop.eup %1792  ;;  %v404_v56 = vadd.f32 1e-05, %v372_v49  ;;  %v479_v1 = vmul.f32 %v2359_v29, %v441_v52 }
 0x19b   :  { %v381_v57 = vadd.f32 1e-05, %v349_v40  ;;  %v1795_v58 = vpop.eup %1794  ;;  %v294_v60 = vpop.xlane.xlu1 %293  ;;  %773 = vmatmul.mubr.bf16.vlgmr.msra.gmra.mrb[0].mxu0 %v2371_v50  ;;  %v540_v0 = vadd.f32 %v2363_v39, %v502_v27  ;;  %v442_v30 = vmul.f32 %v1793_v53, %v2215_v55 }
 0x19c   :  { %v340_v47 = vpop.xlane.xlu0 %339  ;;  %1804 = vrsqrt.f32 %v404_v56  ;;  %v350_v2 = vmul.f32 0.0078125, %v294_v60  ;;  %782 = vmatprep.mubr.bf16.mxu0 %v1995_v4  ;;  %v465_v54 = vmul.f32 %v1795_v58, %v2222_v62  ;;  %v517_v8 = vadd.f32 %v2363_v39, %v479_v1  ;;  %v1777_v1 = vld [vmem:[#allocation8 + $0x50] ss:$12 sps:$4 sm:$0xff]  }
 0x19d   :  { %v373_v3 = vmul.f32 0.0078125, %v340_v47  ;;  %1806 = vrsqrt.f32 %v381_v57  ;;  %v2382_v31 = vpack.c.bf16 %v540_v0, %v539_v61  ;;  %v480_v22 = vmul.f32 %v2359_v29, %v442_v30 }
 0x19e   :  { %v1797_v7 = vpop.eup %1796  ;;  %v382_v34 = vadd.f32 1e-05, %v350_v2  ;;  %v503_v43 = vmul.f32 %v2359_v29, %v465_v54 }
 0x19f   :  { %v405_v36 = vadd.f32 1e-05, %v373_v3  ;;  %v1799_v37 = vpop.eup %1798  ;;  %v342_v55 = vpop.xlane.xlu1 %341  ;;  %893 = vmatmul.mubr.bf16.vlgmr.msra.gmra.mrb[0].mxu1 %v2382_v31  ;;  %v518_v42 = vadd.f32 %v2363_v39, %v480_v22  ;;  %v466_v62 = vmul.f32 %v1797_v7, %v2225_v63 }
 0x1a0   :  { %v296_v38 = vpop.xlane.xlu0 %295  ;;  %1808 = vrsqrt.f32 %v382_v34  ;;  %v374_v46 = vmul.f32 0.0078125, %v342_v55  ;;  %1676 = vmatpush3.bf16.msra.mxu1 %v2321_v35  ;;  %902 = vmatprep.mubr.bf16.mxu1 %v1995_v4  ;;  %v443_v40 = vmul.f32 %v1799_v37, %v2232_v32  ;;  %v541_v57 = vadd.f32 %v2363_v39, %v503_v43 }
 0x1a1   :  { %v351_v44 = vmul.f32 0.0078125, %v296_v38  ;;  %1810 = vrsqrt.f32 %v405_v36  ;;  %1677 = vmatprep.subr.bf16.mxu1 %v1775_v5  ;;  %v2392_v45 = vpack.c.bf16 %v518_v42, %v517_v8  ;;  %v504_v49 = vmul.f32 %v2359_v29, %v466_v62  ;;  %v1778_v8 = vld [vmem:[#allocation8 + $0x68] ss:$12 sps:$4 sm:$0xff]  }
 0x1a2   :  { %v1801_v27 = vpop.eup %1800  ;;  %v406_v63 = vadd.f32 1e-05, %v374_v46  ;;  %v481_v47 = vmul.f32 %v2359_v29, %v443_v40 }
 0x1a3   :  { %v383_v52 = vadd.f32 1e-05, %v351_v44  ;;  %v1803_v53 = vpop.eup %1802  ;;  %v298_v56 = vpop.xlane.xlu1 %297  ;;  %783 = vmatmul.mubr.bf16.gmra.mrb[4].mxu0 %v2392_v45  ;;  %v542_v58 = vadd.f32 %v2363_v39, %v504_v49  ;;  %v444_v60 = vmul.f32 %v1801_v27, %v2235_v6 }
 0x1a4   :  { %v300_v35 = vpop.xlane.xlu0 %299  ;;  %1812 = vrsqrt.f32 %v406_v63  ;;  %v352_v61 = vmul.f32 0.0078125, %v298_v56  ;;  %1678 = vmatpush3.bf16.msra.mxu1 %v1775_v5  ;;  %792 = vmatprep.mubr.bf16.mxu0 %v1995_v4  ;;  %v467_v0 = vmul.f32 %v1803_v53, %v2242_v41  ;;  %v519_v34 = vadd.f32 %v2363_v39, %v481_v47 }
 0x1a5   :  { %v353_v32 = vmul.f32 0.0078125, %v300_v35  ;;  %1814 = vrsqrt.f32 %v383_v52  ;;  %1679 = vmatprep.subr.bf16.mxu1 %v1776_v48  ;;  %v2403_v30 = vpack.c.bf16 %v542_v58, %v541_v57  ;;  %v482_v2 = vmul.f32 %v2359_v29, %v444_v60  ;;  %v1779_v35 = vld [vmem:[#allocation8 + $0x80] ss:$12 sps:$4 sm:$0xff]  }
 0x1a6   :  { %v1805_v3 = vpop.eup %1804  ;;  %v384_v54 = vadd.f32 1e-05, %v352_v61  ;;  %v505_v37 = vmul.f32 %v2359_v29, %v467_v0 }
 0x1a7   :  { %v385_v6 = vadd.f32 1e-05, %v353_v32  ;;  %v1807_v22 = vpop.eup %1806  ;;  %v302_v7 = vpop.xlane.xlu1 %301  ;;  %903 = vmatmul.mubr.bf16.gmra.mrb[4].mxu1 %v2403_v30  ;;  %v520_v36 = vadd.f32 %v2363_v39, %v482_v2  ;;  %v468_v41 = vmul.f32 %v1805_v3, %v2245_v9 }
 0x1a8   :  { %v304_v5 = vpop.xlane.xlu0 %303  ;;  %1816 = vrsqrt.f32 %v384_v54  ;;  %v354_v55 = vmul.f32 0.0078125, %v302_v7  ;;  %1680 = vmatpush3.bf16.msra.mxu1 %v1776_v48  ;;  %912 = vmatprep.mubr.bf16.mxu1 %v1995_v4  ;;  %v445_v62 = vmul.f32 %v1807_v22, %v2252_v10  ;;  %v543_v48 = vadd.f32 %v2363_v39, %v505_v37 }
 0x1a9   :  { %1818 = vrsqrt.f32 %v385_v6  ;;  %1681 = vmatprep.subr.bf16.mxu1 %v1777_v1  ;;  %v2412_v38 = vpack.c.bf16 %v520_v36, %v519_v34  ;;  %v506_v42 = vmul.f32 %v2359_v29, %v468_v41  ;;  %v355_v44 = vmul.f32 0.0078125, %v304_v5  ;;  %v1780_v6 = vld [vmem:[#allocation8 + $0x98] ss:$12 sps:$4 sm:$0xff]  }
 0x1aa   :  { %v1809_v43 = vpop.eup %1808  ;;  %v386_v46 = vadd.f32 1e-05, %v354_v55  ;;  %v483_v52 = vmul.f32 %v2359_v29, %v445_v62 }
 0x1ab   :  { %v1811_v9 = vpop.eup %1810  ;;  %v306_v49 = vpop.xlane.xlu1 %305  ;;  %793 = vmatmul.mubr.bf16.gmra.mrb[8].mxu0 %v2412_v38  ;;  %v544_v27 = vadd.f32 %v2363_v39, %v506_v42  ;;  %v446_v63 = vmul.f32 %v1809_v43, %v2255_v11  ;;  %v387_v60 = vadd.f32 1e-05, %v355_v44  ;;  %v1781_v44 = vld [vmem:[#allocation8 + $0xb0] ss:$12 sps:$4 sm:$0xff]  }
 0x1ac   :  { %v308_v40 = vpop.xlane.xlu0 %307  ;;  %1820 = vrsqrt.f32 %v386_v46  ;;  %v356_v53 = vmul.f32 0.0078125, %v306_v49  ;;  %1682 = vmatpush3.bf16.msra.mxu1 %v1777_v1  ;;  %802 = vmatprep.mubr.bf16.mxu0 %v1995_v4  ;;  %v469_v10 = vmul.f32 %v1811_v9, %v2262_v12  ;;  %v521_v0 = vadd.f32 %v2363_v39, %v483_v52 }
 0x1ad   :  { %1683 = vmatprep.subr.bf16.mxu1 %v1778_v8  ;;  %v2423_v56 = vpack.c.bf16 %v544_v27, %v543_v48  ;;  %v484_v57 = vmul.f32 %v2359_v29, %v446_v63  ;;  %v357_v34 = vmul.f32 0.0078125, %v308_v40 }
 0x1ae   :  { %v1813_v58 = vpop.eup %1812  ;;  %v388_v47 = vadd.f32 1e-05, %v356_v53  ;;  %v507_v2 = vmul.f32 %v2359_v29, %v469_v10 }
 0x1af   :  { %v1815_v61 = vpop.eup %1814  ;;  %v310_v11 = vpop.xlane.xlu1 %309  ;;  %913 = vmatmul.mubr.bf16.gmra.mrb[8].mxu1 %v2423_v56  ;;  %v522_v1 = vadd.f32 %v2363_v39, %v484_v57  ;;  %v470_v12 = vmul.f32 %v1813_v58, %v2265_v13  ;;  %v389_v40 = vadd.f32 1e-05, %v357_v34 }
 0x1b0   :  { %v312_v32 = vpop.xlane.xlu0 %311  ;;  %1822 = vrsqrt.f32 %v388_v47  ;;  %v358_v3 = vmul.f32 0.0078125, %v310_v11  ;;  %1684 = vmatpush3.bf16.msra.mxu1 %v1778_v8  ;;  %922 = vmatprep.mubr.bf16.mxu1 %v1995_v4  ;;  %v447_v7 = vmul.f32 %v1815_v61, %v2272_v14  ;;  %v545_v37 = vadd.f32 %v2363_v39, %v507_v2 }
 0x1b1   :  { %1685 = vmatprep.subr.bf16.mxu1 %v1779_v35  ;;  %v2432_v54 = vpack.c.bf16 %v522_v1, %v521_v0  ;;  %v508_v22 = vmul.f32 %v2359_v29, %v470_v12  ;;  %1824 = vrsqrt.f32 %v387_v60  ;;  %v359_v48 = vmul.f32 0.0078125, %v312_v32 }
 0x1b2   :  { %v1817_v5 = vpop.eup %1816  ;;  %v485_v42 = vmul.f32 %v2359_v29, %v447_v7  ;;  %v390_v62 = vadd.f32 1e-05, %v358_v3 }
 0x1b3   :  { %v1819_v36 = vpop.eup %1818  ;;  %v314_v13 = vpop.xlane.xlu1 %313  ;;  %803 = vmatmul.mubr.bf16.gmra.mrb[12].mxu0 %v2432_v54  ;;  %v546_v55 = vadd.f32 %v2363_v39, %v508_v22  ;;  %v448_v8 = vmul.f32 %v1817_v5, %v2275_v15  ;;  %v391_v0 = vadd.f32 1e-05, %v359_v48 }
 0x1b4   :  { %v316_v41 = vpop.xlane.xlu0 %315  ;;  %v360_v43 = vmul.f32 0.0078125, %v314_v13  ;;  %1686 = vmatpush3.bf16.msra.mxu1 %v1779_v35  ;;  %812 = vmatprep.mubr.bf16.mxu0 %v1995_v4  ;;  %v449_v15 = vmul.f32 %v1819_v36, %v2282_v16  ;;  %v523_v10 = vadd.f32 %v2363_v39, %v485_v42  ;;  %1826 = vrsqrt.f32 %v390_v62 }
 0x1b5   :  { %v361_v14 = vmul.f32 0.0078125, %v316_v41  ;;  %1687 = vmatprep.subr.bf16.mxu1 %v1780_v6  ;;  %v2442_v46 = vpack.c.bf16 %v546_v55, %v545_v37  ;;  %v486_v9 = vmul.f32 %v2359_v29, %v448_v8 }
 0x1b6   :  { %v1821_v49 = vpop.eup %1820  ;;  %v392_v63 = vadd.f32 1e-05, %v360_v43  ;;  %v487_v12 = vmul.f32 %v2359_v29, %v449_v15 }
 0x1b7   :  { %v393_v27 = vadd.f32 1e-05, %v361_v14  ;;  %v318_v52 = vpop.xlane.xlu1 %317  ;;  %923 = vmatmul.mubr.bf16.gmra.mrb[12].mxu1 %v2442_v46  ;;  %v524_v35 = vadd.f32 %v2363_v39, %v486_v9  ;;  %v450_v57 = vmul.f32 %v1821_v49, %v2285_v17 }
 0x1b8   :  { %v320_v53 = vpop.xlane.xlu0 %319  ;;  %v362_v58 = vmul.f32 0.0078125, %v318_v52  ;;  %1688 = vmatpush3.bf16.msra.mxu1 %v1780_v6  ;;  %1691 = vmatprep.mubr.bf16.mxu1 %v2371_v50  ;;  %v525_v36 = vadd.f32 %v2363_v39, %v487_v12 }
 0x1b9   :  { %v363_v60 = vmul.f32 0.0078125, %v320_v53  ;;  %1828 = vrsqrt.f32 %v393_v27  ;;  %1689 = vmatprep.subr.bf16.mxu1 %v1781_v44  ;;  %v551_v16 = vpack.c.bf16 %v524_v35, %v523_v10  ;;  %v488_v47 = vmul.f32 %v2359_v29, %v450_v57 }
 0x1ba   :  { %v1823_v61 = vpop.eup %1822  ;;  %1830 = vrsqrt.f32 %v389_v40  ;;  %v394_v11 = vadd.f32 1e-05, %v362_v58 }
 0x1bb   :  { %v395_v32 = vadd.f32 1e-05, %v363_v60  ;;  %1832 = vrsqrt.f32 %v392_v63  ;;  %v322_v1 = vpop.xlane.xlu1 %321  ;;  %813 = vmatmul.mubr.bf16.gmra.mrb[16].mxu0 %v551_v16  ;;  %v1825_v2 = vpop.eup %1824  ;;  %v526_v6 = vadd.f32 %v2363_v39, %v488_v47  ;;  %v452_v22 = vmul.f32 %v1823_v61, %v2295_v19 }
 0x1bc   :  { %v324_v17 = vpop.xlane.xlu0 %323  ;;  %1834 = vrsqrt.f32 %v394_v11  ;;  %v364_v3 = vmul.f32 0.0078125, %v322_v1  ;;  %1690 = vmatpush3.bf16.msra.mxu1 %v1781_v44  ;;  %822 = vmatprep.mubr.bf16.mxu0 %v1995_v4  ;;  %v451_v13 = vmul.f32 %v1825_v2, %v2292_v18 }
 0x1bd   :  { %v365_v50 = vmul.f32 0.0078125, %v324_v17  ;;  %1836 = vrsqrt.f32 %v395_v32  ;;  %v552_v37 = vpack.c.bf16 %v526_v6, %v525_v36  ;;  %v490_v55 = vmul.f32 %v2359_v29, %v452_v22 }
 0x1be   :  { %v396_v7 = vadd.f32 1e-05, %v364_v3  ;;  %1838 = vrsqrt.f32 %v391_v0  ;;  %v1827_v8 = vpop.eup %1826  ;;  %v489_v62 = vmul.f32 %v2359_v29, %v451_v13 }
 0x1bf   :  { %v397_v5 = vadd.f32 1e-05, %v365_v50  ;;  %v326_v34 = vpop.xlane.xlu1 %325  ;;  %1692 = vmatmul.mubr.bf16.vlgmr.msra.gmra.mrb[16].mxu1 %v2392_v45  ;;  %v528_v14 = vadd.f32 %v2363_v39, %v490_v55 }
 0x1c0   :  { %1840 = vrsqrt.f32 %v396_v7  ;;  %v366_v41 = vmul.f32 0.0078125, %v326_v34  ;;  %1695 = vmatprep.mubr.bf16.mxu1 %v2412_v38  ;;  %v454_v38 = vmul.f32 %v1827_v8, %v2305_v21  ;;  %v527_v40 = vadd.f32 %v2363_v39, %v489_v62  ;;  %v2508_v34 = vld [vmem:[#allocation10] sm:$0x7] }
 0x1c1   :  { %1842 = vrsqrt.f32 %v397_v5 }
 0x1c2   :  { %v398_v19 = vadd.f32 1e-05, %v366_v41  ;;  %v553_v52 = vpack.c.bf16 %v528_v14, %v527_v40  ;;  %v492_v21 = vmul.f32 %v2359_v29, %v454_v38 }
 0x1c3   :  { %v1829_v42 = vpop.eup %1828  ;;  %823 = vmatmul.mubr.bf16.gmra.mrb[20].mxu0 %v552_v37 }
 0x1c4   :  { %v1831_v43 = vpop.eup %1830  ;;  %1844 = vrsqrt.f32 %v398_v19  ;;  %832 = vmatprep.mubr.bf16.mxu0 %v1995_v4  ;;  %v457_v18 = vmul.f32 %v1829_v42, %v2327_v24 }
 0x1c5   :  { %v1833_v45 = vpop.eup %1832  ;;  %v453_v48 = vmul.f32 %v1831_v43, %v2302_v20 }
 0x1c6   :  { %v1835_v44 = vpop.eup %1834  ;;  %v495_v9 = vmul.f32 %v2359_v29, %v457_v18 }
 0x1c7   :  { %v1837_v49 = vpop.eup %1836  ;;  %1696 = vmatmul.mubr.bf16.gmra.mrb[20].mxu1 %v2432_v54  ;;  %v458_v27 = vmul.f32 %v1835_v44, %v2330_v25  ;;  %v456_v54 = vmul.f32 %v1833_v45, %v2317_v23  ;;  %v491_v20 = vmul.f32 %v2359_v29, %v453_v48  ;;  %v530_v23 = vadd.f32 %v2363_v39, %v492_v21 }
 0x1c8   :  { %1699 = vmatprep.mubr.bf16.mxu1 %v551_v16  ;;  %v533_v24 = vadd.f32 %v2363_v39, %v495_v9  ;;  %v459_v15 = vmul.f32 %v1837_v49, %v2337_v51  ;;  %v1839_v63 = vpop.eup %1838 }
 0x1c9   :  { %v496_v53 = vmul.f32 %v2359_v29, %v458_v27  ;;  %v455_v51 = vmul.f32 %v1839_v63, %v2314_v33  ;;  %v494_v32 = vmul.f32 %v2359_v29, %v456_v54 }
 0x1ca   :  { %v1841_v10 = vpop.eup %1840  ;;  %v497_v35 = vmul.f32 %v2359_v29, %v459_v15 }
 0x1cb   :  { %v1843_v57 = vpop.eup %1842  ;;  %833 = vmatmul.mubr.bf16.gmra.mrb[24].mxu0 %v553_v52  ;;  %v534_v25 = vadd.f32 %v2363_v39, %v496_v53  ;;  %v460_v58 = vmul.f32 %v1841_v10, %v2340_v26  ;;  %v529_v26 = vadd.f32 %v2363_v39, %v491_v20  ;;  %v532_v50 = vadd.f32 %v2363_v39, %v494_v32 }
 0x1cc   :  { %842 = vmatprep.mubr.bf16.mxu0 %v1995_v4  ;;  %v535_v60 = vadd.f32 %v2363_v39, %v497_v35  ;;  %v461_v16 = vmul.f32 %v1843_v57, %v2347_v59  ;;  %v493_v59 = vmul.f32 %v2359_v29, %v455_v51 }
 0x1cd   :  { %v556_v47 = vpack.c.bf16 %v534_v25, %v533_v24  ;;  %v498_v61 = vmul.f32 %v2359_v29, %v460_v58  ;;  %v554_v12 = vpack.c.bf16 %v530_v23, %v529_v26 }
 0x1ce   :  { %v1845_v11 = vpop.eup %1844  ;;  %v499_v0 = vmul.f32 %v2359_v29, %v461_v16  ;;  %v531_v22 = vadd.f32 %v2363_v39, %v493_v59 }
 0x1cf   :  { %1700 = vmatmul.mubr.bf16.gmra.mrb[24].mxu1 %v552_v37  ;;  %v536_v1 = vadd.f32 %v2363_v39, %v498_v61  ;;  %v462_v33 = vmul.f32 %v1845_v11, %v2350_v28 }
 0x1d0   :  { %1703 = vmatprep.mubr.bf16.mxu1 %v553_v52  ;;  %v537_v17 = vadd.f32 %v2363_v39, %v499_v0  ;;  %v555_v28 = vpack.c.bf16 %v532_v50, %v531_v22 }
 0x1d1   :  { %v557_v2 = vpack.c.bf16 %v536_v1, %v535_v60  ;;  %v500_v3 = vmul.f32 %v2359_v29, %v462_v33  ;;  %v597_v29 = vlaneseq }
 0x1d3   :  { %843 = vmatmul.mubr.bf16.gmra.mrb[28].mxu0 %v554_v12  ;;  %v538_v6 = vadd.f32 %v2363_v39, %v500_v3  ;;  %v2505_v39 = vshrl.u32 %v597_v29, 7 }
 0x1d4   :  { %852 = vmatprep.mubr.bf16.mxu0 %v1995_v4 }
 0x1d5   :  { %v558_v7 = vpack.c.bf16 %v538_v6, %v537_v17  ;;  %v599_v5 = vsub.s32 0, %v2505_v39  ;;  %v603_v36 = vsub.s32 1, %v2505_v39 }
 0x1d7   :  { %1704 = vmatmul.mubr.bf16.gmra.mrb[28].mxu1 %v554_v12 }
 0x1d8   :  { %1707 = vmatprep.mubr.bf16.mxu1 %v555_v28 }
 0x1db   :  { %853 = vmatmul.mubr.bf16.gmra.mrb[32].mxu0 %v555_v28 }
 0x1dc   :  { %862 = vmatprep.mubr.bf16.mxu0 %v1995_v4 }
 0x1df   :  { %1708 = vmatmul.mubr.bf16.gmra.mrb[32].mxu1 %v556_v47 }
 0x1e0   :  { %1711 = vmatprep.mubr.bf16.mxu1 %v557_v2 }
 0x1e3   :  { %863 = vmatmul.mubr.bf16.gmra.mrb[36].mxu0 %v556_v47 }
 0x1e4   :  { %872 = vmatprep.mubr.bf16.mxu0 %v1995_v4 }
 0x1e7   :  { %1712 = vmatmul.mubr.bf16.gmra.mrb[36].mxu1 %v558_v7 }
 0x1e8   :  { %1715 = vmatprep.mubr.bf16.mxu1 %v2382_v31  ;;  %v2512_v31 = vrot.slane %v2508_v34, %v599_v5 }
 0x1eb   :  { %873 = vmatmul.mubr.bf16.gmra.mrb[40].mxu0 %v557_v2 }
 0x1ec   :  { %882 = vmatprep.mubr.bf16.mxu0 %v1995_v4  ;;  %v2515_v4 = vrot.slane %v2508_v34, %v603_v36 }
 0x1ef   :  { %1716 = vmatmul.mubr.bf16.gmra.mrb[40].mxu1 %v2403_v30 }
 0x1f0   :  { %1719 = vmatprep.mubr.bf16.mxu1 %v2423_v56 }
 0x1f3   :  { %883 = vmatmul.mubr.bf16.gmra.mrb[44].mxu0 %v558_v7 }
 0x1f7   :  { %1720 = vmatmul.mubr.bf16.gmra.mrb[44].mxu1 %v2442_v46 }
 0x26e   :  { %v774_v30 = vpop.f32.mrb[0].mxu0 }
 0x26f   :  { %v775_v56 = vadd.f32 %v774_v30, %v2512_v31  ;;  %v776_v13 = vpop.f32.mrb[1].mxu0 }
 0x270   :  { %v777_v46 = vadd.f32 %v776_v13, %v2515_v4  ;;  %v778_v41 = vpop.f32.mrb[2].mxu0 }
 0x271   :  { %v779_v37 = vadd.f32 %v778_v41, %v2512_v31  ;;  %v780_v55 = vpop.f32.mrb[3].mxu0 }
 0x272   :  { %v1587_v8 = vpack.c.bf16 %v777_v46, %v775_v56  ;;  %v781_v19 = vadd.f32 %v780_v55, %v2515_v4  ;;  %v894_v42 = vpop.f32.mrb[0].mxu1 }
 0x273   :  { %v895_v62 = vadd.f32 %v894_v42, %v2512_v31  ;;  %v896_v43 = vpop.f32.mrb[1].mxu1 }
 0x274   :  { %1414 = vst [vmem:[#allocation11] sm:$0xff] %v1587_v8  ;;  %v1589_v18 = vpack.c.bf16 %v781_v19, %v779_v37  ;;  %v897_v45 = vadd.f32 %v896_v43, %v2515_v4  ;;  %v898_v14 = vpop.f32.mrb[2].mxu1 }
 0x275   :  { %v899_v38 = vadd.f32 %v898_v14, %v2512_v31  ;;  %v900_v44 = vpop.f32.mrb[3].mxu1 }
 0x276   :  { %1416 = vst [vmem:[#allocation11 + $0xc] sm:$0xff] %v1589_v18  ;;  %v1635_v9 = vpack.c.bf16 %v897_v45, %v895_v62  ;;  %v901_v49 = vadd.f32 %v900_v44, %v2515_v4  ;;  %v784_v40 = vpop.f32.mrb[4].mxu0  ;;  %v607_v18 = vsub.s32 2, %v2505_v39 }
 0x277   :  { %v785_v48 = vadd.f32 %v784_v40, %v2512_v31  ;;  %v786_v27 = vpop.f32.mrb[5].mxu0 }
 0x278   :  { %1462 = vst [vmem:[#allocation11 + $0x120] sm:$0xff] %v1635_v9  ;;  %v1637_v24 = vpack.c.bf16 %v901_v49, %v899_v38  ;;  %v787_v15 = vadd.f32 %v786_v27, %v2515_v4  ;;  %v788_v63 = vpop.f32.mrb[6].mxu0 }
 0x279   :  { %v789_v52 = vadd.f32 %v788_v63, %v2512_v31  ;;  %v790_v21 = vpop.f32.mrb[7].mxu0 }
 0x27a   :  { %1464 = vst [vmem:[#allocation11 + $0x12c] sm:$0xff] %v1637_v24  ;;  %v1591_v53 = vpack.c.bf16 %v787_v15, %v785_v48  ;;  %v791_v10 = vadd.f32 %v790_v21, %v2515_v4  ;;  %v904_v54 = vpop.f32.mrb[4].mxu1  ;;  %v2552_v15 = vrot.slane %v2508_v34, %v607_v18 }
 0x27b   :  { %v905_v35 = vadd.f32 %v904_v54, %v2512_v31  ;;  %v906_v57 = vpop.f32.mrb[5].mxu1 }
 0x27c   :  { %1418 = vst [vmem:[#allocation11 + $0x18] sm:$0xff] %v1591_v53  ;;  %v1593_v20 = vpack.c.bf16 %v791_v10, %v789_v52  ;;  %v907_v25 = vadd.f32 %v906_v57, %v2515_v4  ;;  %v908_v58 = vpop.f32.mrb[6].mxu1 }
 0x27d   :  { %v909_v51 = vadd.f32 %v908_v58, %v2512_v31  ;;  %v910_v60 = vpop.f32.mrb[7].mxu1 }
 0x27e   :  { %1420 = vst [vmem:[#allocation11 + $0x24] sm:$0xff] %v1593_v20  ;;  %v1639_v16 = vpack.c.bf16 %v907_v25, %v905_v35  ;;  %v911_v23 = vadd.f32 %v910_v60, %v2515_v4  ;;  %v794_v47 = vpop.f32.mrb[8].mxu0 }
 0x27f   :  { %v795_v61 = vadd.f32 %v794_v47, %v2512_v31  ;;  %v796_v11 = vpop.f32.mrb[9].mxu0 }
 0x280   :  { %1466 = vst [vmem:[#allocation11 + $0x138] sm:$0xff] %v1639_v16  ;;  %v1641_v32 = vpack.c.bf16 %v911_v23, %v909_v51  ;;  %v797_v0 = vadd.f32 %v796_v11, %v2515_v4  ;;  %v798_v26 = vpop.f32.mrb[10].mxu0 }
 0x281   :  { %v799_v1 = vadd.f32 %v798_v26, %v2512_v31  ;;  %v800_v33 = vpop.f32.mrb[11].mxu0 }
 0x282   :  { %1468 = vst [vmem:[#allocation11 + $0x144] sm:$0xff] %v1641_v32  ;;  %v1595_v59 = vpack.c.bf16 %v797_v0, %v795_v61  ;;  %v801_v17 = vadd.f32 %v800_v33, %v2515_v4  ;;  %v914_v12 = vpop.f32.mrb[8].mxu1 }
 0x283   :  { %v915_v2 = vadd.f32 %v914_v12, %v2512_v31  ;;  %v916_v3 = vpop.f32.mrb[9].mxu1 }
 0x284   :  { %1422 = vst [vmem:[#allocation11 + $0x30] sm:$0xff] %v1595_v59  ;;  %v1597_v50 = vpack.c.bf16 %v801_v17, %v799_v1  ;;  %v917_v6 = vadd.f32 %v916_v3, %v2515_v4  ;;  %v918_v22 = vpop.f32.mrb[10].mxu1 }
 0x285   :  { %v919_v7 = vadd.f32 %v918_v22, %v2512_v31  ;;  %v920_v28 = vpop.f32.mrb[11].mxu1 }
 0x286   :  { %1424 = vst [vmem:[#allocation11 + $0x3c] sm:$0xff] %v1597_v50  ;;  %v1643_v29 = vpack.c.bf16 %v917_v6, %v915_v2  ;;  %v921_v5 = vadd.f32 %v920_v28, %v2515_v4  ;;  %v804_v36 = vpop.f32.mrb[12].mxu0 }
 0x287   :  { %v805_v30 = vadd.f32 %v804_v36, %v2512_v31  ;;  %v806_v56 = vpop.f32.mrb[13].mxu0 }
 0x288   :  { %1470 = vst [vmem:[#allocation11 + $0x150] sm:$0xff] %v1643_v29  ;;  %v1645_v13 = vpack.c.bf16 %v921_v5, %v919_v7  ;;  %v807_v46 = vadd.f32 %v806_v56, %v2515_v4  ;;  %v808_v41 = vpop.f32.mrb[14].mxu0 }
 0x289   :  { %v809_v37 = vadd.f32 %v808_v41, %v2512_v31  ;;  %v810_v55 = vpop.f32.mrb[15].mxu0 }
 0x28a   :  { %1472 = vst [vmem:[#allocation11 + $0x15c] sm:$0xff] %v1645_v13  ;;  %v1599_v8 = vpack.c.bf16 %v807_v46, %v805_v30  ;;  %v811_v19 = vadd.f32 %v810_v55, %v2515_v4  ;;  %v924_v42 = vpop.f32.mrb[12].mxu1 }
 0x28b   :  { %v925_v62 = vadd.f32 %v924_v42, %v2512_v31  ;;  %v926_v43 = vpop.f32.mrb[13].mxu1 }
 0x28c   :  { %1426 = vst [vmem:[#allocation11 + $0x48] sm:$0xff] %v1599_v8  ;;  %v1601_v45 = vpack.c.bf16 %v811_v19, %v809_v37  ;;  %v927_v14 = vadd.f32 %v926_v43, %v2515_v4  ;;  %v928_v38 = vpop.f32.mrb[14].mxu1 }
 0x28d   :  { %v929_v44 = vadd.f32 %v928_v38, %v2512_v31  ;;  %v930_v9 = vpop.f32.mrb[15].mxu1 }
 0x28e   :  { %1428 = vst [vmem:[#allocation11 + $0x54] sm:$0xff] %v1601_v45  ;;  %v1647_v49 = vpack.c.bf16 %v927_v14, %v925_v62  ;;  %v931_v40 = vadd.f32 %v930_v9, %v2515_v4  ;;  %v814_v48 = vpop.f32.mrb[16].mxu0 }
 0x28f   :  { %v815_v27 = vadd.f32 %v814_v48, %v2512_v31  ;;  %v816_v24 = vpop.f32.mrb[17].mxu0 }
 0x290   :  { %1474 = vst [vmem:[#allocation11 + $0x168] sm:$0xff] %v1647_v49  ;;  %v1649_v39 = vpack.c.bf16 %v931_v40, %v929_v44  ;;  %v817_v63 = vadd.f32 %v816_v24, %v2515_v4  ;;  %v818_v52 = vpop.f32.mrb[18].mxu0 }
 0x291   :  { %v819_v21 = vadd.f32 %v818_v52, %v2512_v31  ;;  %v820_v53 = vpop.f32.mrb[19].mxu0 }
 0x292   :  { %1476 = vst [vmem:[#allocation11 + $0x174] sm:$0xff] %v1649_v39  ;;  %v1603_v10 = vpack.c.bf16 %v817_v63, %v815_v27  ;;  %v821_v54 = vadd.f32 %v820_v53, %v2515_v4  ;;  %v1693_v35 = vpop.f32.mrb[16].mxu1 }
 0x293   :  { %v976_v57 = vadd.f32 %v1693_v35, %v2552_v15  ;;  %v967_v20 = vpop.f32.mrb[17].mxu1 }
 0x294   :  { %1430 = vst [vmem:[#allocation11 + $0x60] sm:$0xff] %v1603_v10  ;;  %v1605_v25 = vpack.c.bf16 %v821_v54, %v819_v21  ;;  %v968_v34 = vadd.f32 %v967_v20, %v2552_v15  ;;  %v1694_v58 = vpop.f32.mrb[18].mxu1 }
 0x295   :  { %v1592_v51 = vpack.c.bf16 %v976_v57, %v976_v57  ;;  %v979_v60 = vadd.f32 %v1694_v58, %v2552_v15  ;;  %v970_v16 = vpop.f32.mrb[19].mxu1 }
 0x296   :  { %1432 = vst [vmem:[#allocation11 + $0x6c] sm:$0xff] %v1605_v25  ;;  %v1588_v23 = vpack.c.bf16 %v968_v34, %v968_v34  ;;  %v971_v47 = vadd.f32 %v970_v16, %v2552_v15  ;;  %v824_v61 = vpop.f32.mrb[20].mxu0 }
 0x297   :  { %1419 = vst [vmem:[#allocation11 + $0x20] sm:$0xf] %v1592_v51  ;;  %v1594_v11 = vpack.c.bf16 %v979_v60, %v979_v60  ;;  %v825_v32 = vadd.f32 %v824_v61, %v2512_v31  ;;  %v826_v0 = vpop.f32.mrb[21].mxu0 }
 0x298   :  { %1415 = vst [vmem:[#allocation11 + $0x8] sm:$0xf] %v1588_v23  ;;  %v1590_v26 = vpack.c.bf16 %v971_v47, %v971_v47  ;;  %v827_v1 = vadd.f32 %v826_v0, %v2515_v4  ;;  %v828_v33 = vpop.f32.mrb[22].mxu0 }
 0x299   :  { %1421 = vst [vmem:[#allocation11 + $0x2c] sm:$0xf] %v1594_v11  ;;  %v829_v59 = vadd.f32 %v828_v33, %v2512_v31  ;;  %v830_v17 = vpop.f32.mrb[23].mxu0 }
 0x29a   :  { %1417 = vst [vmem:[#allocation11 + $0x14] sm:$0xf] %v1590_v26  ;;  %v1607_v12 = vpack.c.bf16 %v827_v1, %v825_v32  ;;  %v831_v2 = vadd.f32 %v830_v17, %v2515_v4  ;;  %v1697_v3 = vpop.f32.mrb[20].mxu1 }
 0x29b   :  { %v992_v50 = vadd.f32 %v1697_v3, %v2552_v15  ;;  %v983_v6 = vpop.f32.mrb[21].mxu1 }
 0x29c   :  { %1434 = vst [vmem:[#allocation11 + $0x78] sm:$0xff] %v1607_v12  ;;  %v1609_v22 = vpack.c.bf16 %v831_v2, %v829_v59  ;;  %v984_v7 = vadd.f32 %v983_v6, %v2552_v15  ;;  %v1698_v28 = vpop.f32.mrb[22].mxu1 }
 0x29d   :  { %v1600_v29 = vpack.c.bf16 %v992_v50, %v992_v50  ;;  %v995_v5 = vadd.f32 %v1698_v28, %v2552_v15  ;;  %v986_v36 = vpop.f32.mrb[23].mxu1 }
 0x29e   :  { %1436 = vst [vmem:[#allocation11 + $0x84] sm:$0xff] %v1609_v22  ;;  %v1596_v30 = vpack.c.bf16 %v984_v7, %v984_v7  ;;  %v987_v56 = vadd.f32 %v986_v36, %v2552_v15  ;;  %v834_v13 = vpop.f32.mrb[24].mxu0 }
 0x29f   :  { %1427 = vst [vmem:[#allocation11 + $0x50] sm:$0xf] %v1600_v29  ;;  %v1602_v46 = vpack.c.bf16 %v995_v5, %v995_v5  ;;  %v835_v41 = vadd.f32 %v834_v13, %v2512_v31  ;;  %v836_v37 = vpop.f32.mrb[25].mxu0 }
 0x2a0   :  { %1423 = vst [vmem:[#allocation11 + $0x38] sm:$0xf] %v1596_v30  ;;  %v1598_v55 = vpack.c.bf16 %v987_v56, %v987_v56  ;;  %v837_v8 = vadd.f32 %v836_v37, %v2515_v4  ;;  %v838_v19 = vpop.f32.mrb[26].mxu0 }
 0x2a1   :  { %1429 = vst [vmem:[#allocation11 + $0x5c] sm:$0xf] %v1602_v46  ;;  %v839_v42 = vadd.f32 %v838_v19, %v2512_v31  ;;  %v840_v62 = vpop.f32.mrb[27].mxu0 }
 0x2a2   :  { %1425 = vst [vmem:[#allocation11 + $0x44] sm:$0xf] %v1598_v55  ;;  %v1611_v43 = vpack.c.bf16 %v837_v8, %v835_v41  ;;  %v841_v18 = vadd.f32 %v840_v62, %v2515_v4  ;;  %v1701_v45 = vpop.f32.mrb[24].mxu1 }
 0x2a3   :  { %v1008_v14 = vadd.f32 %v1701_v45, %v2552_v15  ;;  %v999_v38 = vpop.f32.mrb[25].mxu1 }
 0x2a4   :  { %1438 = vst [vmem:[#allocation11 + $0x90] sm:$0xff] %v1611_v43  ;;  %v1613_v44 = vpack.c.bf16 %v841_v18, %v839_v42  ;;  %v1000_v9 = vadd.f32 %v999_v38, %v2552_v15  ;;  %v1702_v49 = vpop.f32.mrb[26].mxu1 }
 0x2a5   :  { %v1608_v40 = vpack.c.bf16 %v1008_v14, %v1008_v14  ;;  %v1011_v48 = vadd.f32 %v1702_v49, %v2552_v15  ;;  %v1002_v27 = vpop.f32.mrb[27].mxu1 }
 0x2a6   :  { %1440 = vst [vmem:[#allocation11 + $0x9c] sm:$0xff] %v1613_v44  ;;  %v1604_v24 = vpack.c.bf16 %v1000_v9, %v1000_v9  ;;  %v1003_v39 = vadd.f32 %v1002_v27, %v2552_v15  ;;  %v844_v63 = vpop.f32.mrb[28].mxu0 }
 0x2a7   :  { %1435 = vst [vmem:[#allocation11 + $0x80] sm:$0xf] %v1608_v40  ;;  %v1610_v52 = vpack.c.bf16 %v1011_v48, %v1011_v48  ;;  %v845_v21 = vadd.f32 %v844_v63, %v2512_v31  ;;  %v846_v53 = vpop.f32.mrb[29].mxu0 }
 0x2a8   :  { %1431 = vst [vmem:[#allocation11 + $0x68] sm:$0xf] %v1604_v24  ;;  %v1606_v10 = vpack.c.bf16 %v1003_v39, %v1003_v39  ;;  %v847_v54 = vadd.f32 %v846_v53, %v2515_v4  ;;  %v848_v35 = vpop.f32.mrb[30].mxu0 }
 0x2a9   :  { %1437 = vst [vmem:[#allocation11 + $0x8c] sm:$0xf] %v1610_v52  ;;  %v849_v57 = vadd.f32 %v848_v35, %v2512_v31  ;;  %v850_v20 = vpop.f32.mrb[31].mxu0 }
 0x2aa   :  { %1433 = vst [vmem:[#allocation11 + $0x74] sm:$0xf] %v1606_v10  ;;  %v1615_v25 = vpack.c.bf16 %v847_v54, %v845_v21  ;;  %v851_v34 = vadd.f32 %v850_v20, %v2515_v4  ;;  %v1705_v58 = vpop.f32.mrb[28].mxu1 }
 0x2ab   :  { %v1024_v51 = vadd.f32 %v1705_v58, %v2552_v15  ;;  %v1015_v60 = vpop.f32.mrb[29].mxu1 }
 0x2ac   :  { %1442 = vst [vmem:[#allocation11 + $0xa8] sm:$0xff] %v1615_v25  ;;  %v1617_v16 = vpack.c.bf16 %v851_v34, %v849_v57  ;;  %v1016_v23 = vadd.f32 %v1015_v60, %v2552_v15  ;;  %v1706_v47 = vpop.f32.mrb[30].mxu1 }
 0x2ad   :  { %v1616_v61 = vpack.c.bf16 %v1024_v51, %v1024_v51  ;;  %v1027_v11 = vadd.f32 %v1706_v47, %v2552_v15  ;;  %v1018_v32 = vpop.f32.mrb[31].mxu1 }
 0x2ae   :  { %1444 = vst [vmem:[#allocation11 + $0xb4] sm:$0xff] %v1617_v16  ;;  %v1612_v0 = vpack.c.bf16 %v1016_v23, %v1016_v23  ;;  %v1019_v26 = vadd.f32 %v1018_v32, %v2552_v15  ;;  %v854_v1 = vpop.f32.mrb[32].mxu0 }
 0x2af   :  { %1443 = vst [vmem:[#allocation11 + $0xb0] sm:$0xf] %v1616_v61  ;;  %v1618_v33 = vpack.c.bf16 %v1027_v11, %v1027_v11  ;;  %v855_v59 = vadd.f32 %v854_v1, %v2512_v31  ;;  %v856_v17 = vpop.f32.mrb[33].mxu0 }
 0x2b0   :  { %1439 = vst [vmem:[#allocation11 + $0x98] sm:$0xf] %v1612_v0  ;;  %v1614_v12 = vpack.c.bf16 %v1019_v26, %v1019_v26  ;;  %v857_v2 = vadd.f32 %v856_v17, %v2515_v4  ;;  %v858_v3 = vpop.f32.mrb[34].mxu0 }
 0x2b1   :  { %1445 = vst [vmem:[#allocation11 + $0xbc] sm:$0xf] %v1618_v33  ;;  %v859_v50 = vadd.f32 %v858_v3, %v2512_v31  ;;  %v860_v6 = vpop.f32.mrb[35].mxu0 }
 0x2b2   :  { %1441 = vst [vmem:[#allocation11 + $0xa4] sm:$0xf] %v1614_v12  ;;  %v1619_v22 = vpack.c.bf16 %v857_v2, %v855_v59  ;;  %v861_v7 = vadd.f32 %v860_v6, %v2515_v4  ;;  %v1709_v28 = vpop.f32.mrb[32].mxu1 }
 0x2b3   :  { %v1040_v29 = vadd.f32 %v1709_v28, %v2552_v15  ;;  %v1031_v5 = vpop.f32.mrb[33].mxu1 }
 0x2b4   :  { %1446 = vst [vmem:[#allocation11 + $0xc0] sm:$0xff] %v1619_v22  ;;  %v1621_v36 = vpack.c.bf16 %v861_v7, %v859_v50  ;;  %v1032_v30 = vadd.f32 %v1031_v5, %v2552_v15  ;;  %v1710_v56 = vpop.f32.mrb[34].mxu1 }
 0x2b5   :  { %v1624_v13 = vpack.c.bf16 %v1040_v29, %v1040_v29  ;;  %v1043_v46 = vadd.f32 %v1710_v56, %v2552_v15  ;;  %v1034_v41 = vpop.f32.mrb[35].mxu1 }
 0x2b6   :  { %1448 = vst [vmem:[#allocation11 + $0xcc] sm:$0xff] %v1621_v36  ;;  %v1620_v37 = vpack.c.bf16 %v1032_v30, %v1032_v30  ;;  %v1035_v55 = vadd.f32 %v1034_v41, %v2552_v15  ;;  %v864_v8 = vpop.f32.mrb[36].mxu0 }
 0x2b7   :  { %1451 = vst [vmem:[#allocation11 + $0xe0] sm:$0xf] %v1624_v13  ;;  %v1626_v19 = vpack.c.bf16 %v1043_v46, %v1043_v46  ;;  %v865_v42 = vadd.f32 %v864_v8, %v2512_v31  ;;  %v866_v62 = vpop.f32.mrb[37].mxu0 }
 0x2b8   :  { %1447 = vst [vmem:[#allocation11 + $0xc8] sm:$0xf] %v1620_v37  ;;  %v1622_v43 = vpack.c.bf16 %v1035_v55, %v1035_v55  ;;  %v867_v18 = vadd.f32 %v866_v62, %v2515_v4  ;;  %v868_v45 = vpop.f32.mrb[38].mxu0 }
 0x2b9   :  { %1453 = vst [vmem:[#allocation11 + $0xec] sm:$0xf] %v1626_v19  ;;  %v869_v14 = vadd.f32 %v868_v45, %v2512_v31  ;;  %v870_v38 = vpop.f32.mrb[39].mxu0 }
 0x2ba   :  { %1449 = vst [vmem:[#allocation11 + $0xd4] sm:$0xf] %v1622_v43  ;;  %v1623_v44 = vpack.c.bf16 %v867_v18, %v865_v42  ;;  %v871_v9 = vadd.f32 %v870_v38, %v2515_v4  ;;  %v1713_v49 = vpop.f32.mrb[36].mxu1 }
 0x2bb   :  { %v1056_v40 = vadd.f32 %v1713_v49, %v2552_v15  ;;  %v1047_v48 = vpop.f32.mrb[37].mxu1 }
 0x2bc   :  { %1450 = vst [vmem:[#allocation11 + $0xd8] sm:$0xff] %v1623_v44  ;;  %v1625_v27 = vpack.c.bf16 %v871_v9, %v869_v14  ;;  %v1048_v24 = vadd.f32 %v1047_v48, %v2552_v15  ;;  %v1714_v39 = vpop.f32.mrb[38].mxu1 }
 0x2bd   :  { %v1632_v63 = vpack.c.bf16 %v1056_v40, %v1056_v40  ;;  %v1059_v52 = vadd.f32 %v1714_v39, %v2552_v15  ;;  %v1050_v21 = vpop.f32.mrb[39].mxu1 }
 0x2be   :  { %1452 = vst [vmem:[#allocation11 + $0xe4] sm:$0xff] %v1625_v27  ;;  %v1628_v53 = vpack.c.bf16 %v1048_v24, %v1048_v24  ;;  %v1051_v10 = vadd.f32 %v1050_v21, %v2552_v15  ;;  %v874_v54 = vpop.f32.mrb[40].mxu0 }
 0x2bf   :  { %1459 = vst [vmem:[#allocation11 + $0x110] sm:$0xf] %v1632_v63  ;;  %v1634_v35 = vpack.c.bf16 %v1059_v52, %v1059_v52  ;;  %v875_v57 = vadd.f32 %v874_v54, %v2512_v31  ;;  %v876_v20 = vpop.f32.mrb[41].mxu0 }
 0x2c0   :  { %1455 = vst [vmem:[#allocation11 + $0xf8] sm:$0xf] %v1628_v53  ;;  %v1630_v25 = vpack.c.bf16 %v1051_v10, %v1051_v10  ;;  %v877_v34 = vadd.f32 %v876_v20, %v2515_v4  ;;  %v878_v58 = vpop.f32.mrb[42].mxu0 }
 0x2c1   :  { %1461 = vst [vmem:[#allocation11 + $0x11c] sm:$0xf] %v1634_v35  ;;  %v879_v51 = vadd.f32 %v878_v58, %v2512_v31  ;;  %v880_v60 = vpop.f32.mrb[43].mxu0 }
 0x2c2   :  { %1457 = vst [vmem:[#allocation11 + $0x104] sm:$0xf] %v1630_v25  ;;  %v1627_v16 = vpack.c.bf16 %v877_v34, %v875_v57  ;;  %v881_v23 = vadd.f32 %v880_v60, %v2515_v4  ;;  %v1717_v47 = vpop.f32.mrb[40].mxu1 }
 0x2c3   :  { %v1072_v61 = vadd.f32 %v1717_v47, %v2552_v15  ;;  %v1063_v11 = vpop.f32.mrb[41].mxu1 }
 0x2c4   :  { %1454 = vst [vmem:[#allocation11 + $0xf0] sm:$0xff] %v1627_v16  ;;  %v1629_v32 = vpack.c.bf16 %v881_v23, %v879_v51  ;;  %v1064_v0 = vadd.f32 %v1063_v11, %v2552_v15  ;;  %v1718_v26 = vpop.f32.mrb[42].mxu1 }
 0x2c5   :  { %v1640_v1 = vpack.c.bf16 %v1072_v61, %v1072_v61  ;;  %v1075_v33 = vadd.f32 %v1718_v26, %v2552_v15  ;;  %v1066_v59 = vpop.f32.mrb[43].mxu1 }
 0x2c6   :  { %1456 = vst [vmem:[#allocation11 + $0xfc] sm:$0xff] %v1629_v32  ;;  %v1636_v17 = vpack.c.bf16 %v1064_v0, %v1064_v0  ;;  %v1067_v12 = vadd.f32 %v1066_v59, %v2552_v15  ;;  %v884_v2 = vpop.f32.mrb[44].mxu0 }
 0x2c7   :  { %1467 = vst [vmem:[#allocation11 + $0x140] sm:$0xf] %v1640_v1  ;;  %v1642_v3 = vpack.c.bf16 %v1075_v33, %v1075_v33  ;;  %v885_v50 = vadd.f32 %v884_v2, %v2512_v31  ;;  %v886_v6 = vpop.f32.mrb[45].mxu0 }
 0x2c8   :  { %1463 = vst [vmem:[#allocation11 + $0x128] sm:$0xf] %v1636_v17  ;;  %v1638_v22 = vpack.c.bf16 %v1067_v12, %v1067_v12  ;;  %v887_v7 = vadd.f32 %v886_v6, %v2515_v4  ;;  %v888_v28 = vpop.f32.mrb[46].mxu0 }
 0x2c9   :  { %1469 = vst [vmem:[#allocation11 + $0x14c] sm:$0xf] %v1642_v3  ;;  %v889_v29 = vadd.f32 %v888_v28, %v2512_v31  ;;  %v890_v5 = vpop.f32.mrb[47].mxu0 }
 0x2ca   :  { %1465 = vst [vmem:[#allocation11 + $0x134] sm:$0xf] %v1638_v22  ;;  %v1631_v36 = vpack.c.bf16 %v887_v7, %v885_v50  ;;  %v891_v30 = vadd.f32 %v890_v5, %v2515_v4  ;;  %v1721_v56 = vpop.f32.mrb[44].mxu1 }
 0x2cb   :  { %v1088_v13 = vadd.f32 %v1721_v56, %v2552_v15  ;;  %v1079_v46 = vpop.f32.mrb[45].mxu1 }
 0x2cc   :  { %1458 = vst [vmem:[#allocation11 + $0x108] sm:$0xff] %v1631_v36  ;;  %v1633_v41 = vpack.c.bf16 %v891_v30, %v889_v29  ;;  %v1080_v37 = vadd.f32 %v1079_v46, %v2552_v15  ;;  %v1722_v55 = vpop.f32.mrb[46].mxu1 }
 0x2cd   :  { %v1648_v8 = vpack.c.bf16 %v1088_v13, %v1088_v13  ;;  %v1091_v19 = vadd.f32 %v1722_v55, %v2552_v15  ;;  %v1082_v42 = vpop.f32.mrb[47].mxu1 }
 0x2ce   :  { %1460 = vst [vmem:[#allocation11 + $0x114] sm:$0xff] %v1633_v41  ;;  %v1644_v31 = vpack.c.bf16 %v1080_v37, %v1080_v37  ;;  %v1083_v62 = vadd.f32 %v1082_v42, %v2552_v15 }
 0x2cf   :  { %1475 = vst [vmem:[#allocation11 + $0x170] sm:$0xf] %v1648_v8  ;;  %v1650_v4 = vpack.c.bf16 %v1091_v19, %v1091_v19 }
 0x2d0   :  { %1471 = vst [vmem:[#allocation11 + $0x158] sm:$0xf] %v1644_v31  ;;  %v1646_v43 = vpack.c.bf16 %v1083_v62, %v1083_v62 }
 0x2d1   :  { %1477 = vst [vmem:[#allocation11 + $0x17c] sm:$0xf] %v1650_v4 }
 0x2d2   :  { %1473 = vst [vmem:[#allocation11 + $0x164] sm:$0xf] %v1646_v43 }
 0x2d3   :  { %1967 = shalt.err (!%p1964_p2)
}
 0x2d4   :  { %s1968_s10 = scalar_lea.hbm %s2637_s5, 6144 }
 0x2d5   :  { %p1969_p3 = scmp.ne.s32.totalorder %s2637_s5, %s1968_s10  ;;  %p1972_p4 = scmp.lt.u32.totalorder %s1968_s10, %s2637_s5 }
 0x2d7   :  { %p1974_p5 = pnand %p1972_p4, %p1969_p3 }
 0x2d9   :  { %1977 = shalt.err (!%p1974_p5)
}
 0x2da   :  { %1489 = dma.vmem_to_hbm [thread:$0]  %s1484_s6, 6144, %s2637_s5, [#allocation4], %s1988_s1, %s1988_s1, %s1989_s16  }
 0x2db   :  { %1984 = dma.done.wait [#allocation4], 6144  }
 0x2dc   :  { %1985 = vsyncadd [#allocation4], 4294961152 }
 0x2dd   :  { %1493 = vsyncpa [#allocation3], 1 }
 0x2de   :  { %1494 = vsyncpa [#allocation6], 1 }
 0x2df   :  { %1495 = vsyncpa [#allocation9], 1 }
 0x2e0   :  { %1496 = vsyncpa [#allocation4], 1 }

</bundles_post_ra>
